<compile_context>
chip_gen: v6e
topology: v6e:2x2x1
jax: 0.10.0
libtpu: 0.0.40
codegen_flags: <defaults>
</compile_context>

<pallas_src>
import math

import jax
import jax.numpy as jnp
from jax.experimental import pallas as pl
from jax.experimental.pallas import tpu as pltpu

# ----------------------------- configuration --------------------------------
B, S, D, H, DFF = 2, 8, 32, 4, 64          # batch, seq, d_model, heads, ffn
N_LAYERS = 2
VOCAB, MAX_POS, N_SEG = 100, 64, 2
N_LABELS = 3
EPS = 1e-12
DH = D // H
M = B * S                                   # flattened token count
LPAD = 128                                  # lane-dense padded label dim
NEG_INF = -1e30

# --- packed small-vector slab layout (one [VEC_ROWS, 128] f32 input ref) -----
ROW_EMB_G = 0                               # embedding LayerNorm gamma [D]
ROW_EMB_B = 1                               # embedding LayerNorm beta  [D]
ROW_CLS_B = 2                               # classifier bias, lane padded [LPAD]
ROW_LAYER0 = 3
ROWS_PER_LAYER = 8                          # bqkv, bo, ln1_g, ln1_b, b1, b2, ln2_g, ln2_b
VEC_ROWS = ((ROW_LAYER0 + N_LAYERS * ROWS_PER_LAYER + 7) // 8) * 8   # -> 24


# ------------------------------ shared math ----------------------------------
def _layernorm(x, g, b):
    mu = jnp.mean(x, axis=-1, keepdims=True)
    var = jnp.mean((x - mu) ** 2, axis=-1, keepdims=True)
    return (x - mu) * jax.lax.rsqrt(var + EPS) * g + b


# -------------------------------- kernel -------------------------------------
def fused_bert_kernel(emb_ref, vec_ref, wqkv_ref, wo_ref, w1_ref, w2_ref,
                      cw_ref, out_ref):
    # Small-vector slab rows (static sublane index + static lane slice).
    def row(r, width):
        return vec_ref[r:r + 1, 0:width]            # [1, width] f32

    # ---- embedding LayerNorm (hidden state lives in registers/VMEM values) --
    x = _layernorm(emb_ref[...], row(ROW_EMB_G, D), row(ROW_EMB_B, D))

    scale = 1.0 / math.sqrt(DH)

    # ---- statically unrolled encoder layers (all weights VMEM-resident) -----
    for l in range(N_LAYERS):
        base = ROW_LAYER0 + l * ROWS_PER_LAYER
        xb = x.astype(jnp.bfloat16)

        # Fused QKV: one [M,D]x[D,3D] matmul, bf16 operands, f32 accumulation.
        qkv = (jnp.dot(xb, wqkv_ref[l], preferred_element_type=jnp.float32)
               + row(base + 0, 3 * D))
        q3 = qkv[:, 0:D].reshape(B, S, D)
        k3 = qkv[:, D:2 * D].reshape(B, S, D)
        v3 = qkv[:, 2 * D:3 * D].reshape(B, S, D)

        # Static head loop; contexts kept in registers (no scratch, no partial
        # stores).  TODO(synk): batch over heads at real H via a single
        # [B*H, S, DH] contraction after a relayout.
        ctx_heads = []
        for h in range(H):
            sl = slice(h * DH, (h + 1) * DH)
            qh = q3[:, :, sl].astype(jnp.bfloat16)
            kh = k3[:, :, sl].astype(jnp.bfloat16)
            vh = v3[:, :, sl].astype(jnp.bfloat16)
            sc = jnp.einsum('bqd,bkd->bqk', qh, kh,
                            preferred_element_type=jnp.float32) * scale
            sc = sc - jnp.max(sc, axis=-1, keepdims=True)
            p = jnp.exp(sc)
            p = p * pl.reciprocal(jnp.sum(p, axis=-1, keepdims=True),
                                  approx=True)
            c = jnp.einsum('bqk,bkd->bqd', p.astype(jnp.bfloat16), vh,
                           preferred_element_type=jnp.float32)   # [B, S, DH]
            ctx_heads.append(c.reshape(M, DH))
        ctx = jnp.concatenate(ctx_heads, axis=-1)                # [M, D] f32

        # Attention output projection (single full-width matmul).
        attn = (jnp.dot(ctx.astype(jnp.bfloat16), wo_ref[l],
                        preferred_element_type=jnp.float32) + row(base + 1, D))
        h1 = _layernorm(x + attn, row(base + 2, D), row(base + 3, D))

        # Feed-forward.
        ff = (jnp.dot(h1.astype(jnp.bfloat16), w1_ref[l],
                      preferred_element_type=jnp.float32) + row(base + 4, DFF))
        # TODO(synk): HF/PyTorch BERT default is exact erf GELU; tanh approx is
        # used here and matched exactly by the in-script reference.
        ff = jax.nn.gelu(ff, approximate=True)
        ff = (jnp.dot(ff.astype(jnp.bfloat16), w2_ref[l],
                      preferred_element_type=jnp.float32) + row(base + 5, D))

        x = _layernorm(h1 + ff, row(base + 6, D), row(base + 7, D))

    # ---- classifier + LogSoftmax on the [CLS] token only --------------------
    cls_h = x.reshape(B, S, D)[:, 0, :]                          # [B, D]
    logits = (jnp.dot(cls_h.astype(jnp.bfloat16), cw_ref[...],
                      preferred_element_type=jnp.float32)
              + row(ROW_CLS_B, LPAD))                            # [B, LPAD]
    col = jax.lax.broadcasted_iota(jnp.int32, (B, LPAD), 1)
    logits = jnp.where(col < N_LABELS, logits, NEG_INF)
    z = logits - jnp.max(logits, axis=-1, keepdims=True)
    lse = jnp.log(jnp.sum(jnp.exp(z), axis=-1, keepdims=True))
    out_ref[...] = z - lse


# ------------------------------- wrapper --------------------------------------
_VMEM_SPEC = pl.BlockSpec(memory_space=pltpu.MemorySpace.VMEM)


@jax.jit
def pallas_forward(prep, token_ids, position_ids, segment_ids):
    # Embedding-table gathers are data-dependent; kept as plain-JAX glue.
    emb = (prep['tok_emb'][token_ids]
           + prep['pos_emb'][position_ids]
           + prep['seg_emb'][segment_ids]).reshape(M, D)
    out_pad = pl.pallas_call(
        fused_bert_kernel,
        out_shape=jax.ShapeDtypeStruct((B, LPAD), jnp.float32),
        in_specs=[_VMEM_SPEC] * 7,
        out_specs=_VMEM_SPEC,
    )(emb, prep['vecs'], prep['wqkv'], prep['wo'], prep['w1'], prep['w2'],
      prep['cls_w'])
    # Real labels are the first N_LABELS lanes of the padded slab.
    return out_pad[:, :N_LABELS]


# ---------------------------- parameters --------------------------------------
def init_params(key):
    """Raw parameters in the PyTorch nn.Linear [out_features, in_features] convention."""
    def nrm(k, shape, scale=0.02):
        return scale * jax.random.normal(k, shape, jnp.float32)

    keys = iter(jax.random.split(key, 64))
    raw = {
        'tok_emb': nrm(next(keys), (VOCAB, D)),
        'pos_emb': nrm(next(keys), (MAX_POS, D)),
        'seg_emb': nrm(next(keys), (N_SEG, D)),
        'emb_ln_g': jnp.ones((D,), jnp.float32),
        'emb_ln_b': jnp.zeros((D,), jnp.float32),
        'cls_w': nrm(next(keys), (N_LABELS, D)),       # nn.Linear(d_model, n_labels)
        'cls_b': nrm(next(keys), (N_LABELS,)),
        'layers': [],
    }
    for _ in range(N_LAYERS):
        raw['layers'].append({
            'wq': nrm(next(keys), (D, D)), 'bq': nrm(next(keys), (D,)),
            'wk': nrm(next(keys), (D, D)), 'bk': nrm(next(keys), (D,)),
            'wv': nrm(next(keys), (D, D)), 'bv': nrm(next(keys), (D,)),
            'wo': nrm(next(keys), (D, D)), 'bo': nrm(next(keys), (D,)),
            'ln1_g': jnp.ones((D,), jnp.float32), 'ln1_b': jnp.zeros((D,), jnp.float32),
            'w1': nrm(next(keys), (DFF, D)), 'b1': nrm(next(keys), (DFF,)),
            'w2': nrm(next(keys), (D, DFF)), 'b2': nrm(next(keys), (D,)),
            'ln2_g': jnp.ones((D,), jnp.float32), 'ln2_b': jnp.zeros((D,), jnp.float32),
        })
    return raw


def prepare_params(raw):
    """Fuse QKV, stack layers, pre-transpose weights to [in,out] bf16, and pack
    all small vectors into one lane-padded f32 slab."""
    wqkv = jnp.stack([
        jnp.concatenate([lp['wq'].T, lp['wk'].T, lp['wv'].T], axis=1)
        for lp in raw['layers']]).astype(jnp.bfloat16)            # [L, D, 3D]
    wo = jnp.stack([lp['wo'].T for lp in raw['layers']]).astype(jnp.bfloat16)
    w1 = jnp.stack([lp['w1'].T for lp in raw['layers']]).astype(jnp.bfloat16)
    w2 = jnp.stack([lp['w2'].T for lp in raw['layers']]).astype(jnp.bfloat16)

    cls_w = jnp.zeros((D, LPAD), jnp.float32).at[:, :N_LABELS].set(raw['cls_w'].T)

    vecs = jnp.zeros((VEC_ROWS, LPAD), jnp.float32)
    vecs = vecs.at[ROW_EMB_G, :D].set(raw['emb_ln_g'])
    vecs = vecs.at[ROW_EMB_B, :D].set(raw['emb_ln_b'])
    vecs = vecs.at[ROW_CLS_B, :N_LABELS].set(raw['cls_b'])
    for l, lp in enumerate(raw['layers']):
        base = ROW_LAYER0 + l * ROWS_PER_LAYER
        vecs = vecs.at[base + 0, :3 * D].set(
            jnp.concatenate([lp['bq'], lp['bk'], lp['bv']]))
        vecs = vecs.at[base + 1, :D].set(lp['bo'])
        vecs = vecs.at[base + 2, :D].set(lp['ln1_g'])
        vecs = vecs.at[base + 3, :D].set(lp['ln1_b'])
        vecs = vecs.at[base + 4, :DFF].set(lp['b1'])
        vecs = vecs.at[base + 5, :D].set(lp['b2'])
        vecs = vecs.at[base + 6, :D].set(lp['ln2_g'])
        vecs = vecs.at[base + 7, :D].set(lp['ln2_b'])

    return {
        'tok_emb': raw['tok_emb'], 'pos_emb': raw['pos_emb'], 'seg_emb': raw['seg_emb'],
        'vecs': vecs,
        'wqkv': wqkv, 'wo': wo, 'w1': w1, 'w2': w2,
        'cls_w': cls_w.astype(jnp.bfloat16),
    }


# --------------------------- pure-JAX reference --------------------------------
def reference_forward(prep, token_ids, position_ids, segment_ids):
    vecs = prep['vecs']

    def row(r, width):
        return vecs[r:r + 1, :width]

    emb = (prep['tok_emb'][token_ids] + prep['pos_emb'][position_ids]
           + prep['seg_emb'][segment_ids]).reshape(M, D)
    x = _layernorm(emb, row(ROW_EMB_G, D), row(ROW_EMB_B, D))
    scale = 1.0 / math.sqrt(DH)
    for l in range(N_LAYERS):
        base = ROW_LAYER0 + l * ROWS_PER_LAYER
        xb = x.astype(jnp.bfloat16)
        qkv = jnp.dot(xb, prep['wqkv'][l],
                      preferred_element_type=jnp.float32) + row(base + 0, 3 * D)
        q3 = qkv[:, 0:D].reshape(B, S, D)
        k3 = qkv[:, D:2 * D].reshape(B, S, D)
        v3 = qkv[:, 2 * D:3 * D].reshape(B, S, D)
        ctx_heads = []
        for h in range(H):
            sl = slice(h * DH, (h + 1) * DH)
            qh = q3[:, :, sl].astype(jnp.bfloat16)
            kh = k3[:, :, sl].astype(jnp.bfloat16)
            vh = v3[:, :, sl].astype(jnp.bfloat16)
            sc = jnp.einsum('bqd,bkd->bqk', qh, kh,
                            preferred_element_type=jnp.float32) * scale
            sc = sc - jnp.max(sc, axis=-1, keepdims=True)
            p = jnp.exp(sc)
            p = p / jnp.sum(p, axis=-1, keepdims=True)
            c = jnp.einsum('bqk,bkd->bqd', p.astype(jnp.bfloat16), vh,
                           preferred_element_type=jnp.float32)
            ctx_heads.append(c.reshape(M, DH))
        ctx = jnp.concatenate(ctx_heads, axis=-1)
        attn = jnp.dot(ctx.astype(jnp.bfloat16), prep['wo'][l],
                       preferred_element_type=jnp.float32) + row(base + 1, D)
        h1 = _layernorm(x + attn, row(base + 2, D), row(base + 3, D))
        ff = jnp.dot(h1.astype(jnp.bfloat16), prep['w1'][l],
                     preferred_element_type=jnp.float32) + row(base + 4, DFF)
        ff = jax.nn.gelu(ff, approximate=True)
        ff = jnp.dot(ff.astype(jnp.bfloat16), prep['w2'][l],
                     preferred_element_type=jnp.float32) + row(base + 5, D)
        x = _layernorm(h1 + ff, row(base + 6, D), row(base + 7, D))

    cls_h = x.reshape(B, S, D)[:, 0, :]
    logits = (jnp.dot(cls_h.astype(jnp.bfloat16), prep['cls_w'],
                      preferred_element_type=jnp.float32) + row(ROW_CLS_B, LPAD))
    col = jnp.arange(LPAD)[None, :]
    logits = jnp.where(col < N_LABELS, logits, NEG_INF)
    z = logits - jnp.max(logits, axis=-1, keepdims=True)
    lse = jnp.log(jnp.sum(jnp.exp(z), axis=-1, keepdims=True))
    return (z - lse)[:, :N_LABELS]


# ----------------------------------- main --------------------------------------
if __name__ == "__main__":
    key = jax.random.PRNGKey(0)
    pkey, tkey, skey = jax.random.split(key, 3)
    raw = init_params(pkey)
    prep = prepare_params(raw)

    token_ids = jax.random.randint(tkey, (B, S), 0, VOCAB, dtype=jnp.int32)
    position_ids = jnp.broadcast_to(jnp.arange(S, dtype=jnp.int32), (B, S))
    segment_ids = jax.random.randint(skey, (B, S), 0, N_SEG, dtype=jnp.int32)

    out = pallas_forward(prep, token_ids, position_ids, segment_ids)
    out = jax.block_until_ready(out)

    ref = reference_forward(prep, token_ids, position_ids, segment_ids)
    assert out.shape == (B, N_LABELS), out.shape
    assert jnp.allclose(out, ref, atol=5e-3, rtol=5e-3), (out, ref)

    print("KERNEL_OK")
</pallas_src>

<mosaic_0001>
module attributes {stable_mosaic.version = 11 : i64} {
  func.func @fused_bert_kernel(%arg0: memref<16x32xf32, #tpu.memory_space<vmem>>, %arg1: memref<24x128xf32, #tpu.memory_space<vmem>>, %arg2: memref<2x32x96xbf16, #tpu.memory_space<vmem>>, %arg3: memref<2x32x32xbf16, #tpu.memory_space<vmem>>, %arg4: memref<2x32x64xbf16, #tpu.memory_space<vmem>>, %arg5: memref<2x64x32xbf16, #tpu.memory_space<vmem>>, %arg6: memref<32x128xbf16, #tpu.memory_space<vmem>>, %arg7: memref<2x128xf32, #tpu.memory_space<vmem>>) attributes {dimension_semantics = [], scalar_prefetch = 0 : i64, scratch_operands = 0 : i64, tpu.core_type = #tpu.core_type<tc>} {
    %c0 = arith.constant 0 : index
    %c0_0 = arith.constant 0 : index
    %0 = vector.load %arg0[%c0, %c0_0] : memref<16x32xf32, #tpu.memory_space<vmem>>, vector<16x32xf32>
    %c0_1 = arith.constant 0 : index
    %c0_2 = arith.constant 0 : index
    %1 = vector.load %arg1[%c0_1, %c0_2] : memref<24x128xf32, #tpu.memory_space<vmem>>, vector<1x32xf32>
    %c1 = arith.constant 1 : index
    %c0_3 = arith.constant 0 : index
    %2 = vector.load %arg1[%c1, %c0_3] : memref<24x128xf32, #tpu.memory_space<vmem>>, vector<1x32xf32>
    %cst = arith.constant dense<0.000000e+00> : vector<16xf32>
    %3 = vector.multi_reduction <add>, %0, %cst [1] : vector<16x32xf32> to vector<16xf32>
    %4 = vector.shape_cast %3 : vector<16xf32> to vector<16x1xf32>
    %cst_4 = arith.constant 3.200000e+01 : f32
    %5 = vector.broadcast %cst_4 : f32 to vector<16x1xf32>
    %6 = arith.divf %4, %5 : vector<16x1xf32>
    %7 = vector.broadcast %6 : vector<16x1xf32> to vector<16x32xf32>
    %8 = arith.subf %0, %7 : vector<16x32xf32>
    %9 = arith.mulf %8, %8 : vector<16x32xf32>
    %cst_5 = arith.constant dense<0.000000e+00> : vector<16xf32>
    %10 = vector.multi_reduction <add>, %9, %cst_5 [1] : vector<16x32xf32> to vector<16xf32>
    %11 = vector.shape_cast %10 : vector<16xf32> to vector<16x1xf32>
    %cst_6 = arith.constant 3.200000e+01 : f32
    %12 = vector.broadcast %cst_6 : f32 to vector<16x1xf32>
    %13 = arith.divf %11, %12 : vector<16x1xf32>
    %14 = vector.broadcast %6 : vector<16x1xf32> to vector<16x32xf32>
    %15 = arith.subf %0, %14 : vector<16x32xf32>
    %cst_7 = arith.constant 9.99999996E-13 : f32
    %16 = vector.broadcast %cst_7 : f32 to vector<16x1xf32>
    %17 = arith.addf %13, %16 : vector<16x1xf32>
    %18 = math.rsqrt %17 : vector<16x1xf32>
    %19 = vector.broadcast %18 : vector<16x1xf32> to vector<16x32xf32>
    %20 = arith.mulf %15, %19 : vector<16x32xf32>
    %21 = vector.broadcast %1 : vector<1x32xf32> to vector<16x32xf32>
    %22 = arith.mulf %20, %21 : vector<16x32xf32>
    %23 = vector.broadcast %2 : vector<1x32xf32> to vector<16x32xf32>
    %24 = arith.addf %22, %23 : vector<16x32xf32>
    %25 = arith.truncf %24 : vector<16x32xf32> to vector<16x32xbf16>
    %c0_8 = arith.constant 0 : index
    %c0_9 = arith.constant 0 : index
    %c0_10 = arith.constant 0 : index
    %26 = vector.load %arg2[%c0_8, %c0_9, %c0_10] : memref<2x32x96xbf16, #tpu.memory_space<vmem>>, vector<1x32x96xbf16>
    %27 = vector.shape_cast %26 : vector<1x32x96xbf16> to vector<32x96xbf16>
    %cst_11 = arith.constant dense<0.000000e+00> : vector<16x96xf32>
    %28 = tpu.matmul %25, %27, %cst_11 {dimension_numbers = #tpu.dot_dimension_numbers<[1], [0], [0], [1], [0, 0, 1, 1], [], []>} : vector<16x32xbf16>, vector<32x96xbf16>, vector<16x96xf32> -> vector<16x96xf32>
    %c3 = arith.constant 3 : index
    %c0_12 = arith.constant 0 : index
    %29 = vector.load %arg1[%c3, %c0_12] : memref<24x128xf32, #tpu.memory_space<vmem>>, vector<1x96xf32>
    %30 = vector.broadcast %29 : vector<1x96xf32> to vector<16x96xf32>
    %31 = arith.addf %28, %30 : vector<16x96xf32>
    %32 = vector.extract_strided_slice %31 {offsets = [0, 0], sizes = [16, 32], strides = [1, 1]} : vector<16x96xf32> to vector<16x32xf32>
    %33 = vector.shape_cast %32 : vector<16x32xf32> to vector<2x8x32xf32>
    %34 = vector.extract_strided_slice %31 {offsets = [0, 32], sizes = [16, 32], strides = [1, 1]} : vector<16x96xf32> to vector<16x32xf32>
    %35 = vector.shape_cast %34 : vector<16x32xf32> to vector<2x8x32xf32>
    %36 = vector.extract_strided_slice %31 {offsets = [0, 64], sizes = [16, 32], strides = [1, 1]} : vector<16x96xf32> to vector<16x32xf32>
    %37 = vector.shape_cast %36 : vector<16x32xf32> to vector<2x8x32xf32>
    %38 = vector.extract_strided_slice %33 {offsets = [0, 0, 0], sizes = [2, 8, 8], strides = [1, 1, 1]} : vector<2x8x32xf32> to vector<2x8x8xf32>
    %39 = arith.truncf %38 : vector<2x8x8xf32> to vector<2x8x8xbf16>
    %40 = vector.extract_strided_slice %35 {offsets = [0, 0, 0], sizes = [2, 8, 8], strides = [1, 1, 1]} : vector<2x8x32xf32> to vector<2x8x8xf32>
    %41 = arith.truncf %40 : vector<2x8x8xf32> to vector<2x8x8xbf16>
    %42 = vector.extract_strided_slice %37 {offsets = [0, 0, 0], sizes = [2, 8, 8], strides = [1, 1, 1]} : vector<2x8x32xf32> to vector<2x8x8xf32>
    %43 = arith.truncf %42 : vector<2x8x8xf32> to vector<2x8x8xbf16>
    "tpu.trace_start"() <{level = 10 : i32, message = "bqd,bkd->bqk"}> : () -> ()
    %cst_13 = arith.constant dense<0.000000e+00> : vector<2x8x8xf32>
    %44 = tpu.matmul %39, %41, %cst_13 {dimension_numbers = #tpu.dot_dimension_numbers<[2], [2], [1], [1], [0, 0, 0, 1, 1, 1], [0], [0]>} : vector<2x8x8xbf16>, vector<2x8x8xbf16>, vector<2x8x8xf32> -> vector<2x8x8xf32>
    "tpu.trace_stop"() : () -> ()
    %cst_14 = arith.constant 0.353553385 : f32
    %45 = vector.broadcast %cst_14 : f32 to vector<2x8x8xf32>
    %46 = arith.mulf %44, %45 : vector<2x8x8xf32>
    %cst_15 = arith.constant dense<0xFF800000> : vector<2x8xf32>
    %47 = vector.multi_reduction <maximumf>, %46, %cst_15 [2] : vector<2x8x8xf32> to vector<2x8xf32>
    %48 = vector.shape_cast %47 : vector<2x8xf32> to vector<2x8x1xf32>
    %49 = vector.broadcast %48 : vector<2x8x1xf32> to vector<2x8x8xf32>
    %50 = arith.subf %46, %49 : vector<2x8x8xf32>
    %51 = math.exp %50 : vector<2x8x8xf32>
    %cst_16 = arith.constant dense<0.000000e+00> : vector<2x8xf32>
    %52 = vector.multi_reduction <add>, %51, %cst_16 [2] : vector<2x8x8xf32> to vector<2x8xf32>
    %53 = vector.shape_cast %52 : vector<2x8xf32> to vector<2x8x1xf32>
    %54 = tpu.reciprocal %53 {approx = true} : vector<2x8x1xf32> -> vector<2x8x1xf32>
    %55 = vector.broadcast %54 : vector<2x8x1xf32> to vector<2x8x8xf32>
    %56 = arith.mulf %51, %55 : vector<2x8x8xf32>
    %57 = arith.truncf %56 : vector<2x8x8xf32> to vector<2x8x8xbf16>
    "tpu.trace_start"() <{level = 10 : i32, message = "bqk,bkd->bqd"}> : () -> ()
    %cst_17 = arith.constant dense<0.000000e+00> : vector<2x8x8xf32>
    %58 = tpu.matmul %57, %43, %cst_17 {dimension_numbers = #tpu.dot_dimension_numbers<[2], [1], [1], [2], [0, 0, 0, 1, 1, 2], [0], [0]>} : vector<2x8x8xbf16>, vector<2x8x8xbf16>, vector<2x8x8xf32> -> vector<2x8x8xf32>
    "tpu.trace_stop"() : () -> ()
    %59 = vector.shape_cast %58 : vector<2x8x8xf32> to vector<16x8xf32>
    %60 = vector.extract_strided_slice %33 {offsets = [0, 0, 8], sizes = [2, 8, 8], strides = [1, 1, 1]} : vector<2x8x32xf32> to vector<2x8x8xf32>
    %61 = arith.truncf %60 : vector<2x8x8xf32> to vector<2x8x8xbf16>
    %62 = vector.extract_strided_slice %35 {offsets = [0, 0, 8], sizes = [2, 8, 8], strides = [1, 1, 1]} : vector<2x8x32xf32> to vector<2x8x8xf32>
    %63 = arith.truncf %62 : vector<2x8x8xf32> to vector<2x8x8xbf16>
    %64 = vector.extract_strided_slice %37 {offsets = [0, 0, 8], sizes = [2, 8, 8], strides = [1, 1, 1]} : vector<2x8x32xf32> to vector<2x8x8xf32>
    %65 = arith.truncf %64 : vector<2x8x8xf32> to vector<2x8x8xbf16>
    "tpu.trace_start"() <{level = 10 : i32, message = "bqd,bkd->bqk"}> : () -> ()
    %cst_18 = arith.constant dense<0.000000e+00> : vector<2x8x8xf32>
    %66 = tpu.matmul %61, %63, %cst_18 {dimension_numbers = #tpu.dot_dimension_numbers<[2], [2], [1], [1], [0, 0, 0, 1, 1, 1], [0], [0]>} : vector<2x8x8xbf16>, vector<2x8x8xbf16>, vector<2x8x8xf32> -> vector<2x8x8xf32>
    "tpu.trace_stop"() : () -> ()
    %cst_19 = arith.constant 0.353553385 : f32
    %67 = vector.broadcast %cst_19 : f32 to vector<2x8x8xf32>
    %68 = arith.mulf %66, %67 : vector<2x8x8xf32>
    %cst_20 = arith.constant dense<0xFF800000> : vector<2x8xf32>
    %69 = vector.multi_reduction <maximumf>, %68, %cst_20 [2] : vector<2x8x8xf32> to vector<2x8xf32>
    %70 = vector.shape_cast %69 : vector<2x8xf32> to vector<2x8x1xf32>
    %71 = vector.broadcast %70 : vector<2x8x1xf32> to vector<2x8x8xf32>
    %72 = arith.subf %68, %71 : vector<2x8x8xf32>
    %73 = math.exp %72 : vector<2x8x8xf32>
    %cst_21 = arith.constant dense<0.000000e+00> : vector<2x8xf32>
    %74 = vector.multi_reduction <add>, %73, %cst_21 [2] : vector<2x8x8xf32> to vector<2x8xf32>
    %75 = vector.shape_cast %74 : vector<2x8xf32> to vector<2x8x1xf32>
    %76 = tpu.reciprocal %75 {approx = true} : vector<2x8x1xf32> -> vector<2x8x1xf32>
    %77 = vector.broadcast %76 : vector<2x8x1xf32> to vector<2x8x8xf32>
    %78 = arith.mulf %73, %77 : vector<2x8x8xf32>
    %79 = arith.truncf %78 : vector<2x8x8xf32> to vector<2x8x8xbf16>
    "tpu.trace_start"() <{level = 10 : i32, message = "bqk,bkd->bqd"}> : () -> ()
    %cst_22 = arith.constant dense<0.000000e+00> : vector<2x8x8xf32>
    %80 = tpu.matmul %79, %65, %cst_22 {dimension_numbers = #tpu.dot_dimension_numbers<[2], [1], [1], [2], [0, 0, 0, 1, 1, 2], [0], [0]>} : vector<2x8x8xbf16>, vector<2x8x8xbf16>, vector<2x8x8xf32> -> vector<2x8x8xf32>
    "tpu.trace_stop"() : () -> ()
    %81 = vector.shape_cast %80 : vector<2x8x8xf32> to vector<16x8xf32>
    %82 = vector.extract_strided_slice %33 {offsets = [0, 0, 16], sizes = [2, 8, 8], strides = [1, 1, 1]} : vector<2x8x32xf32> to vector<2x8x8xf32>
    %83 = arith.truncf %82 : vector<2x8x8xf32> to vector<2x8x8xbf16>
    %84 = vector.extract_strided_slice %35 {offsets = [0, 0, 16], sizes = [2, 8, 8], strides = [1, 1, 1]} : vector<2x8x32xf32> to vector<2x8x8xf32>
    %85 = arith.truncf %84 : vector<2x8x8xf32> to vector<2x8x8xbf16>
    %86 = vector.extract_strided_slice %37 {offsets = [0, 0, 16], sizes = [2, 8, 8], strides = [1, 1, 1]} : vector<2x8x32xf32> to vector<2x8x8xf32>
    %87 = arith.truncf %86 : vector<2x8x8xf32> to vector<2x8x8xbf16>
    "tpu.trace_start"() <{level = 10 : i32, message = "bqd,bkd->bqk"}> : () -> ()
    %cst_23 = arith.constant dense<0.000000e+00> : vector<2x8x8xf32>
    %88 = tpu.matmul %83, %85, %cst_23 {dimension_numbers = #tpu.dot_dimension_numbers<[2], [2], [1], [1], [0, 0, 0, 1, 1, 1], [0], [0]>} : vector<2x8x8xbf16>, vector<2x8x8xbf16>, vector<2x8x8xf32> -> vector<2x8x8xf32>
    "tpu.trace_stop"() : () -> ()
    %cst_24 = arith.constant 0.353553385 : f32
    %89 = vector.broadcast %cst_24 : f32 to vector<2x8x8xf32>
    %90 = arith.mulf %88, %89 : vector<2x8x8xf32>
    %cst_25 = arith.constant dense<0xFF800000> : vector<2x8xf32>
    %91 = vector.multi_reduction <maximumf>, %90, %cst_25 [2] : vector<2x8x8xf32> to vector<2x8xf32>
    %92 = vector.shape_cast %91 : vector<2x8xf32> to vector<2x8x1xf32>
    %93 = vector.broadcast %92 : vector<2x8x1xf32> to vector<2x8x8xf32>
    %94 = arith.subf %90, %93 : vector<2x8x8xf32>
    %95 = math.exp %94 : vector<2x8x8xf32>
    %cst_26 = arith.constant dense<0.000000e+00> : vector<2x8xf32>
    %96 = vector.multi_reduction <add>, %95, %cst_26 [2] : vector<2x8x8xf32> to vector<2x8xf32>
    %97 = vector.shape_cast %96 : vector<2x8xf32> to vector<2x8x1xf32>
    %98 = tpu.reciprocal %97 {approx = true} : vector<2x8x1xf32> -> vector<2x8x1xf32>
    %99 = vector.broadcast %98 : vector<2x8x1xf32> to vector<2x8x8xf32>
    %100 = arith.mulf %95, %99 : vector<2x8x8xf32>
    %101 = arith.truncf %100 : vector<2x8x8xf32> to vector<2x8x8xbf16>
    "tpu.trace_start"() <{level = 10 : i32, message = "bqk,bkd->bqd"}> : () -> ()
    %cst_27 = arith.constant dense<0.000000e+00> : vector<2x8x8xf32>
    %102 = tpu.matmul %101, %87, %cst_27 {dimension_numbers = #tpu.dot_dimension_numbers<[2], [1], [1], [2], [0, 0, 0, 1, 1, 2], [0], [0]>} : vector<2x8x8xbf16>, vector<2x8x8xbf16>, vector<2x8x8xf32> -> vector<2x8x8xf32>
    "tpu.trace_stop"() : () -> ()
    %103 = vector.shape_cast %102 : vector<2x8x8xf32> to vector<16x8xf32>
    %104 = vector.extract_strided_slice %33 {offsets = [0, 0, 24], sizes = [2, 8, 8], strides = [1, 1, 1]} : vector<2x8x32xf32> to vector<2x8x8xf32>
    %105 = arith.truncf %104 : vector<2x8x8xf32> to vector<2x8x8xbf16>
    %106 = vector.extract_strided_slice %35 {offsets = [0, 0, 24], sizes = [2, 8, 8], strides = [1, 1, 1]} : vector<2x8x32xf32> to vector<2x8x8xf32>
    %107 = arith.truncf %106 : vector<2x8x8xf32> to vector<2x8x8xbf16>
    %108 = vector.extract_strided_slice %37 {offsets = [0, 0, 24], sizes = [2, 8, 8], strides = [1, 1, 1]} : vector<2x8x32xf32> to vector<2x8x8xf32>
    %109 = arith.truncf %108 : vector<2x8x8xf32> to vector<2x8x8xbf16>
    "tpu.trace_start"() <{level = 10 : i32, message = "bqd,bkd->bqk"}> : () -> ()
    %cst_28 = arith.constant dense<0.000000e+00> : vector<2x8x8xf32>
    %110 = tpu.matmul %105, %107, %cst_28 {dimension_numbers = #tpu.dot_dimension_numbers<[2], [2], [1], [1], [0, 0, 0, 1, 1, 1], [0], [0]>} : vector<2x8x8xbf16>, vector<2x8x8xbf16>, vector<2x8x8xf32> -> vector<2x8x8xf32>
    "tpu.trace_stop"() : () -> ()
    %cst_29 = arith.constant 0.353553385 : f32
    %111 = vector.broadcast %cst_29 : f32 to vector<2x8x8xf32>
    %112 = arith.mulf %110, %111 : vector<2x8x8xf32>
    %cst_30 = arith.constant dense<0xFF800000> : vector<2x8xf32>
    %113 = vector.multi_reduction <maximumf>, %112, %cst_30 [2] : vector<2x8x8xf32> to vector<2x8xf32>
    %114 = vector.shape_cast %113 : vector<2x8xf32> to vector<2x8x1xf32>
    %115 = vector.broadcast %114 : vector<2x8x1xf32> to vector<2x8x8xf32>
    %116 = arith.subf %112, %115 : vector<2x8x8xf32>
    %117 = math.exp %116 : vector<2x8x8xf32>
    %cst_31 = arith.constant dense<0.000000e+00> : vector<2x8xf32>
    %118 = vector.multi_reduction <add>, %117, %cst_31 [2] : vector<2x8x8xf32> to vector<2x8xf32>
    %119 = vector.shape_cast %118 : vector<2x8xf32> to vector<2x8x1xf32>
    %120 = tpu.reciprocal %119 {approx = true} : vector<2x8x1xf32> -> vector<2x8x1xf32>
    %121 = vector.broadcast %120 : vector<2x8x1xf32> to vector<2x8x8xf32>
    %122 = arith.mulf %117, %121 : vector<2x8x8xf32>
    %123 = arith.truncf %122 : vector<2x8x8xf32> to vector<2x8x8xbf16>
    "tpu.trace_start"() <{level = 10 : i32, message = "bqk,bkd->bqd"}> : () -> ()
    %cst_32 = arith.constant dense<0.000000e+00> : vector<2x8x8xf32>
    %124 = tpu.matmul %123, %109, %cst_32 {dimension_numbers = #tpu.dot_dimension_numbers<[2], [1], [1], [2], [0, 0, 0, 1, 1, 2], [0], [0]>} : vector<2x8x8xbf16>, vector<2x8x8xbf16>, vector<2x8x8xf32> -> vector<2x8x8xf32>
    "tpu.trace_stop"() : () -> ()
    %125 = vector.shape_cast %124 : vector<2x8x8xf32> to vector<16x8xf32>
    %126 = tpu.concatenate %59, %81, %103, %125 in 1 : vector<16x8xf32>, vector<16x8xf32>, vector<16x8xf32>, vector<16x8xf32> -> vector<16x32xf32>
    %127 = arith.truncf %126 : vector<16x32xf32> to vector<16x32xbf16>
    %c0_33 = arith.constant 0 : index
    %c0_34 = arith.constant 0 : index
    %c0_35 = arith.constant 0 : index
    %128 = vector.load %arg3[%c0_33, %c0_34, %c0_35] : memref<2x32x32xbf16, #tpu.memory_space<vmem>>, vector<1x32x32xbf16>
    %129 = vector.shape_cast %128 : vector<1x32x32xbf16> to vector<32x32xbf16>
    %cst_36 = arith.constant dense<0.000000e+00> : vector<16x32xf32>
    %130 = tpu.matmul %127, %129, %cst_36 {dimension_numbers = #tpu.dot_dimension_numbers<[1], [0], [0], [1], [0, 0, 1, 1], [], []>} : vector<16x32xbf16>, vector<32x32xbf16>, vector<16x32xf32> -> vector<16x32xf32>
    %c4 = arith.constant 4 : index
    %c0_37 = arith.constant 0 : index
    %131 = vector.load %arg1[%c4, %c0_37] : memref<24x128xf32, #tpu.memory_space<vmem>>, vector<1x32xf32>
    %132 = vector.broadcast %131 : vector<1x32xf32> to vector<16x32xf32>
    %133 = arith.addf %130, %132 : vector<16x32xf32>
    %134 = arith.addf %24, %133 : vector<16x32xf32>
    %c5 = arith.constant 5 : index
    %c0_38 = arith.constant 0 : index
    %135 = vector.load %arg1[%c5, %c0_38] : memref<24x128xf32, #tpu.memory_space<vmem>>, vector<1x32xf32>
    %c6 = arith.constant 6 : index
    %c0_39 = arith.constant 0 : index
    %136 = vector.load %arg1[%c6, %c0_39] : memref<24x128xf32, #tpu.memory_space<vmem>>, vector<1x32xf32>
    %cst_40 = arith.constant dense<0.000000e+00> : vector<16xf32>
    %137 = vector.multi_reduction <add>, %134, %cst_40 [1] : vector<16x32xf32> to vector<16xf32>
    %138 = vector.shape_cast %137 : vector<16xf32> to vector<16x1xf32>
    %cst_41 = arith.constant 3.200000e+01 : f32
    %139 = vector.broadcast %cst_41 : f32 to vector<16x1xf32>
    %140 = arith.divf %138, %139 : vector<16x1xf32>
    %141 = vector.broadcast %140 : vector<16x1xf32> to vector<16x32xf32>
    %142 = arith.subf %134, %141 : vector<16x32xf32>
    %143 = arith.mulf %142, %142 : vector<16x32xf32>
    %cst_42 = arith.constant dense<0.000000e+00> : vector<16xf32>
    %144 = vector.multi_reduction <add>, %143, %cst_42 [1] : vector<16x32xf32> to vector<16xf32>
    %145 = vector.shape_cast %144 : vector<16xf32> to vector<16x1xf32>
    %cst_43 = arith.constant 3.200000e+01 : f32
    %146 = vector.broadcast %cst_43 : f32 to vector<16x1xf32>
    %147 = arith.divf %145, %146 : vector<16x1xf32>
    %148 = vector.broadcast %140 : vector<16x1xf32> to vector<16x32xf32>
    %149 = arith.subf %134, %148 : vector<16x32xf32>
    %cst_44 = arith.constant 9.99999996E-13 : f32
    %150 = vector.broadcast %cst_44 : f32 to vector<16x1xf32>
    %151 = arith.addf %147, %150 : vector<16x1xf32>
    %152 = math.rsqrt %151 : vector<16x1xf32>
    %153 = vector.broadcast %152 : vector<16x1xf32> to vector<16x32xf32>
    %154 = arith.mulf %149, %153 : vector<16x32xf32>
    %155 = vector.broadcast %135 : vector<1x32xf32> to vector<16x32xf32>
    %156 = arith.mulf %154, %155 : vector<16x32xf32>
    %157 = vector.broadcast %136 : vector<1x32xf32> to vector<16x32xf32>
    %158 = arith.addf %156, %157 : vector<16x32xf32>
    %159 = arith.truncf %158 : vector<16x32xf32> to vector<16x32xbf16>
    %c0_45 = arith.constant 0 : index
    %c0_46 = arith.constant 0 : index
    %c0_47 = arith.constant 0 : index
    %160 = vector.load %arg4[%c0_45, %c0_46, %c0_47] : memref<2x32x64xbf16, #tpu.memory_space<vmem>>, vector<1x32x64xbf16>
    %161 = vector.shape_cast %160 : vector<1x32x64xbf16> to vector<32x64xbf16>
    %cst_48 = arith.constant dense<0.000000e+00> : vector<16x64xf32>
    %162 = tpu.matmul %159, %161, %cst_48 {dimension_numbers = #tpu.dot_dimension_numbers<[1], [0], [0], [1], [0, 0, 1, 1], [], []>} : vector<16x32xbf16>, vector<32x64xbf16>, vector<16x64xf32> -> vector<16x64xf32>
    %c7 = arith.constant 7 : index
    %c0_49 = arith.constant 0 : index
    %163 = vector.load %arg1[%c7, %c0_49] : memref<24x128xf32, #tpu.memory_space<vmem>>, vector<1x64xf32>
    %164 = vector.broadcast %163 : vector<1x64xf32> to vector<16x64xf32>
    %165 = arith.addf %162, %164 : vector<16x64xf32>
    %166 = arith.mulf %165, %165 : vector<16x64xf32>
    %167 = arith.mulf %165, %166 : vector<16x64xf32>
    %cst_50 = arith.constant 4.471500e-02 : f32
    %168 = vector.broadcast %cst_50 : f32 to vector<16x64xf32>
    %169 = arith.mulf %168, %167 : vector<16x64xf32>
    %170 = arith.addf %165, %169 : vector<16x64xf32>
    %cst_51 = arith.constant 0.797884583 : f32
    %171 = vector.broadcast %cst_51 : f32 to vector<16x64xf32>
    %172 = arith.mulf %171, %170 : vector<16x64xf32>
    %173 = math.tanh %172 : vector<16x64xf32>
    %cst_52 = arith.constant 1.000000e+00 : f32
    %174 = vector.broadcast %cst_52 : f32 to vector<16x64xf32>
    %175 = arith.addf %174, %173 : vector<16x64xf32>
    %cst_53 = arith.constant 5.000000e-01 : f32
    %176 = vector.broadcast %cst_53 : f32 to vector<16x64xf32>
    %177 = arith.mulf %176, %175 : vector<16x64xf32>
    %178 = arith.mulf %165, %177 : vector<16x64xf32>
    %179 = arith.truncf %178 : vector<16x64xf32> to vector<16x64xbf16>
    %c0_54 = arith.constant 0 : index
    %c0_55 = arith.constant 0 : index
    %c0_56 = arith.constant 0 : index
    %180 = vector.load %arg5[%c0_54, %c0_55, %c0_56] : memref<2x64x32xbf16, #tpu.memory_space<vmem>>, vector<1x64x32xbf16>
    %181 = vector.shape_cast %180 : vector<1x64x32xbf16> to vector<64x32xbf16>
    %cst_57 = arith.constant dense<0.000000e+00> : vector<16x32xf32>
    %182 = tpu.matmul %179, %181, %cst_57 {dimension_numbers = #tpu.dot_dimension_numbers<[1], [0], [0], [1], [0, 0, 1, 1], [], []>} : vector<16x64xbf16>, vector<64x32xbf16>, vector<16x32xf32> -> vector<16x32xf32>
    %c8 = arith.constant 8 : index
    %c0_58 = arith.constant 0 : index
    %183 = vector.load %arg1[%c8, %c0_58] : memref<24x128xf32, #tpu.memory_space<vmem>>, vector<1x32xf32>
    %184 = vector.broadcast %183 : vector<1x32xf32> to vector<16x32xf32>
    %185 = arith.addf %182, %184 : vector<16x32xf32>
    %186 = arith.addf %158, %185 : vector<16x32xf32>
    %c9 = arith.constant 9 : index
    %c0_59 = arith.constant 0 : index
    %187 = vector.load %arg1[%c9, %c0_59] : memref<24x128xf32, #tpu.memory_space<vmem>>, vector<1x32xf32>
    %c10 = arith.constant 10 : index
    %c0_60 = arith.constant 0 : index
    %188 = vector.load %arg1[%c10, %c0_60] : memref<24x128xf32, #tpu.memory_space<vmem>>, vector<1x32xf32>
    %cst_61 = arith.constant dense<0.000000e+00> : vector<16xf32>
    %189 = vector.multi_reduction <add>, %186, %cst_61 [1] : vector<16x32xf32> to vector<16xf32>
    %190 = vector.shape_cast %189 : vector<16xf32> to vector<16x1xf32>
    %cst_62 = arith.constant 3.200000e+01 : f32
    %191 = vector.broadcast %cst_62 : f32 to vector<16x1xf32>
    %192 = arith.divf %190, %191 : vector<16x1xf32>
    %193 = vector.broadcast %192 : vector<16x1xf32> to vector<16x32xf32>
    %194 = arith.subf %186, %193 : vector<16x32xf32>
    %195 = arith.mulf %194, %194 : vector<16x32xf32>
    %cst_63 = arith.constant dense<0.000000e+00> : vector<16xf32>
    %196 = vector.multi_reduction <add>, %195, %cst_63 [1] : vector<16x32xf32> to vector<16xf32>
    %197 = vector.shape_cast %196 : vector<16xf32> to vector<16x1xf32>
    %cst_64 = arith.constant 3.200000e+01 : f32
    %198 = vector.broadcast %cst_64 : f32 to vector<16x1xf32>
    %199 = arith.divf %197, %198 : vector<16x1xf32>
    %200 = vector.broadcast %192 : vector<16x1xf32> to vector<16x32xf32>
    %201 = arith.subf %186, %200 : vector<16x32xf32>
    %cst_65 = arith.constant 9.99999996E-13 : f32
    %202 = vector.broadcast %cst_65 : f32 to vector<16x1xf32>
    %203 = arith.addf %199, %202 : vector<16x1xf32>
    %204 = math.rsqrt %203 : vector<16x1xf32>
    %205 = vector.broadcast %204 : vector<16x1xf32> to vector<16x32xf32>
    %206 = arith.mulf %201, %205 : vector<16x32xf32>
    %207 = vector.broadcast %187 : vector<1x32xf32> to vector<16x32xf32>
    %208 = arith.mulf %206, %207 : vector<16x32xf32>
    %209 = vector.broadcast %188 : vector<1x32xf32> to vector<16x32xf32>
    %210 = arith.addf %208, %209 : vector<16x32xf32>
    %211 = arith.truncf %210 : vector<16x32xf32> to vector<16x32xbf16>
    %c1_66 = arith.constant 1 : index
    %c0_67 = arith.constant 0 : index
    %c0_68 = arith.constant 0 : index
    %212 = vector.load %arg2[%c1_66, %c0_67, %c0_68] : memref<2x32x96xbf16, #tpu.memory_space<vmem>>, vector<1x32x96xbf16>
    %213 = vector.shape_cast %212 : vector<1x32x96xbf16> to vector<32x96xbf16>
    %cst_69 = arith.constant dense<0.000000e+00> : vector<16x96xf32>
    %214 = tpu.matmul %211, %213, %cst_69 {dimension_numbers = #tpu.dot_dimension_numbers<[1], [0], [0], [1], [0, 0, 1, 1], [], []>} : vector<16x32xbf16>, vector<32x96xbf16>, vector<16x96xf32> -> vector<16x96xf32>
    %c11 = arith.constant 11 : index
    %c0_70 = arith.constant 0 : index
    %215 = vector.load %arg1[%c11, %c0_70] : memref<24x128xf32, #tpu.memory_space<vmem>>, vector<1x96xf32>
    %216 = vector.broadcast %215 : vector<1x96xf32> to vector<16x96xf32>
    %217 = arith.addf %214, %216 : vector<16x96xf32>
    %218 = vector.extract_strided_slice %217 {offsets = [0, 0], sizes = [16, 32], strides = [1, 1]} : vector<16x96xf32> to vector<16x32xf32>
    %219 = vector.shape_cast %218 : vector<16x32xf32> to vector<2x8x32xf32>
    %220 = vector.extract_strided_slice %217 {offsets = [0, 32], sizes = [16, 32], strides = [1, 1]} : vector<16x96xf32> to vector<16x32xf32>
    %221 = vector.shape_cast %220 : vector<16x32xf32> to vector<2x8x32xf32>
    %222 = vector.extract_strided_slice %217 {offsets = [0, 64], sizes = [16, 32], strides = [1, 1]} : vector<16x96xf32> to vector<16x32xf32>
    %223 = vector.shape_cast %222 : vector<16x32xf32> to vector<2x8x32xf32>
    %224 = vector.extract_strided_slice %219 {offsets = [0, 0, 0], sizes = [2, 8, 8], strides = [1, 1, 1]} : vector<2x8x32xf32> to vector<2x8x8xf32>
    %225 = arith.truncf %224 : vector<2x8x8xf32> to vector<2x8x8xbf16>
    %226 = vector.extract_strided_slice %221 {offsets = [0, 0, 0], sizes = [2, 8, 8], strides = [1, 1, 1]} : vector<2x8x32xf32> to vector<2x8x8xf32>
    %227 = arith.truncf %226 : vector<2x8x8xf32> to vector<2x8x8xbf16>
    %228 = vector.extract_strided_slice %223 {offsets = [0, 0, 0], sizes = [2, 8, 8], strides = [1, 1, 1]} : vector<2x8x32xf32> to vector<2x8x8xf32>
    %229 = arith.truncf %228 : vector<2x8x8xf32> to vector<2x8x8xbf16>
    "tpu.trace_start"() <{level = 10 : i32, message = "bqd,bkd->bqk"}> : () -> ()
    %cst_71 = arith.constant dense<0.000000e+00> : vector<2x8x8xf32>
    %230 = tpu.matmul %225, %227, %cst_71 {dimension_numbers = #tpu.dot_dimension_numbers<[2], [2], [1], [1], [0, 0, 0, 1, 1, 1], [0], [0]>} : vector<2x8x8xbf16>, vector<2x8x8xbf16>, vector<2x8x8xf32> -> vector<2x8x8xf32>
    "tpu.trace_stop"() : () -> ()
    %cst_72 = arith.constant 0.353553385 : f32
    %231 = vector.broadcast %cst_72 : f32 to vector<2x8x8xf32>
    %232 = arith.mulf %230, %231 : vector<2x8x8xf32>
    %cst_73 = arith.constant dense<0xFF800000> : vector<2x8xf32>
    %233 = vector.multi_reduction <maximumf>, %232, %cst_73 [2] : vector<2x8x8xf32> to vector<2x8xf32>
    %234 = vector.shape_cast %233 : vector<2x8xf32> to vector<2x8x1xf32>
    %235 = vector.broadcast %234 : vector<2x8x1xf32> to vector<2x8x8xf32>
    %236 = arith.subf %232, %235 : vector<2x8x8xf32>
    %237 = math.exp %236 : vector<2x8x8xf32>
    %cst_74 = arith.constant dense<0.000000e+00> : vector<2x8xf32>
    %238 = vector.multi_reduction <add>, %237, %cst_74 [2] : vector<2x8x8xf32> to vector<2x8xf32>
    %239 = vector.shape_cast %238 : vector<2x8xf32> to vector<2x8x1xf32>
    %240 = tpu.reciprocal %239 {approx = true} : vector<2x8x1xf32> -> vector<2x8x1xf32>
    %241 = vector.broadcast %240 : vector<2x8x1xf32> to vector<2x8x8xf32>
    %242 = arith.mulf %237, %241 : vector<2x8x8xf32>
    %243 = arith.truncf %242 : vector<2x8x8xf32> to vector<2x8x8xbf16>
    "tpu.trace_start"() <{level = 10 : i32, message = "bqk,bkd->bqd"}> : () -> ()
    %cst_75 = arith.constant dense<0.000000e+00> : vector<2x8x8xf32>
    %244 = tpu.matmul %243, %229, %cst_75 {dimension_numbers = #tpu.dot_dimension_numbers<[2], [1], [1], [2], [0, 0, 0, 1, 1, 2], [0], [0]>} : vector<2x8x8xbf16>, vector<2x8x8xbf16>, vector<2x8x8xf32> -> vector<2x8x8xf32>
    "tpu.trace_stop"() : () -> ()
    %245 = vector.shape_cast %244 : vector<2x8x8xf32> to vector<16x8xf32>
    %246 = vector.extract_strided_slice %219 {offsets = [0, 0, 8], sizes = [2, 8, 8], strides = [1, 1, 1]} : vector<2x8x32xf32> to vector<2x8x8xf32>
    %247 = arith.truncf %246 : vector<2x8x8xf32> to vector<2x8x8xbf16>
    %248 = vector.extract_strided_slice %221 {offsets = [0, 0, 8], sizes = [2, 8, 8], strides = [1, 1, 1]} : vector<2x8x32xf32> to vector<2x8x8xf32>
    %249 = arith.truncf %248 : vector<2x8x8xf32> to vector<2x8x8xbf16>
    %250 = vector.extract_strided_slice %223 {offsets = [0, 0, 8], sizes = [2, 8, 8], strides = [1, 1, 1]} : vector<2x8x32xf32> to vector<2x8x8xf32>
    %251 = arith.truncf %250 : vector<2x8x8xf32> to vector<2x8x8xbf16>
    "tpu.trace_start"() <{level = 10 : i32, message = "bqd,bkd->bqk"}> : () -> ()
    %cst_76 = arith.constant dense<0.000000e+00> : vector<2x8x8xf32>
    %252 = tpu.matmul %247, %249, %cst_76 {dimension_numbers = #tpu.dot_dimension_numbers<[2], [2], [1], [1], [0, 0, 0, 1, 1, 1], [0], [0]>} : vector<2x8x8xbf16>, vector<2x8x8xbf16>, vector<2x8x8xf32> -> vector<2x8x8xf32>
    "tpu.trace_stop"() : () -> ()
    %cst_77 = arith.constant 0.353553385 : f32
    %253 = vector.broadcast %cst_77 : f32 to vector<2x8x8xf32>
    %254 = arith.mulf %252, %253 : vector<2x8x8xf32>
    %cst_78 = arith.constant dense<0xFF800000> : vector<2x8xf32>
    %255 = vector.multi_reduction <maximumf>, %254, %cst_78 [2] : vector<2x8x8xf32> to vector<2x8xf32>
    %256 = vector.shape_cast %255 : vector<2x8xf32> to vector<2x8x1xf32>
    %257 = vector.broadcast %256 : vector<2x8x1xf32> to vector<2x8x8xf32>
    %258 = arith.subf %254, %257 : vector<2x8x8xf32>
    %259 = math.exp %258 : vector<2x8x8xf32>
    %cst_79 = arith.constant dense<0.000000e+00> : vector<2x8xf32>
    %260 = vector.multi_reduction <add>, %259, %cst_79 [2] : vector<2x8x8xf32> to vector<2x8xf32>
    %261 = vector.shape_cast %260 : vector<2x8xf32> to vector<2x8x1xf32>
    %262 = tpu.reciprocal %261 {approx = true} : vector<2x8x1xf32> -> vector<2x8x1xf32>
    %263 = vector.broadcast %262 : vector<2x8x1xf32> to vector<2x8x8xf32>
    %264 = arith.mulf %259, %263 : vector<2x8x8xf32>
    %265 = arith.truncf %264 : vector<2x8x8xf32> to vector<2x8x8xbf16>
    "tpu.trace_start"() <{level = 10 : i32, message = "bqk,bkd->bqd"}> : () -> ()
    %cst_80 = arith.constant dense<0.000000e+00> : vector<2x8x8xf32>
    %266 = tpu.matmul %265, %251, %cst_80 {dimension_numbers = #tpu.dot_dimension_numbers<[2], [1], [1], [2], [0, 0, 0, 1, 1, 2], [0], [0]>} : vector<2x8x8xbf16>, vector<2x8x8xbf16>, vector<2x8x8xf32> -> vector<2x8x8xf32>
    "tpu.trace_stop"() : () -> ()
    %267 = vector.shape_cast %266 : vector<2x8x8xf32> to vector<16x8xf32>
    %268 = vector.extract_strided_slice %219 {offsets = [0, 0, 16], sizes = [2, 8, 8], strides = [1, 1, 1]} : vector<2x8x32xf32> to vector<2x8x8xf32>
    %269 = arith.truncf %268 : vector<2x8x8xf32> to vector<2x8x8xbf16>
    %270 = vector.extract_strided_slice %221 {offsets = [0, 0, 16], sizes = [2, 8, 8], strides = [1, 1, 1]} : vector<2x8x32xf32> to vector<2x8x8xf32>
    %271 = arith.truncf %270 : vector<2x8x8xf32> to vector<2x8x8xbf16>
    %272 = vector.extract_strided_slice %223 {offsets = [0, 0, 16], sizes = [2, 8, 8], strides = [1, 1, 1]} : vector<2x8x32xf32> to vector<2x8x8xf32>
    %273 = arith.truncf %272 : vector<2x8x8xf32> to vector<2x8x8xbf16>
    "tpu.trace_start"() <{level = 10 : i32, message = "bqd,bkd->bqk"}> : () -> ()
    %cst_81 = arith.constant dense<0.000000e+00> : vector<2x8x8xf32>
    %274 = tpu.matmul %269, %271, %cst_81 {dimension_numbers = #tpu.dot_dimension_numbers<[2], [2], [1], [1], [0, 0, 0, 1, 1, 1], [0], [0]>} : vector<2x8x8xbf16>, vector<2x8x8xbf16>, vector<2x8x8xf32> -> vector<2x8x8xf32>
    "tpu.trace_stop"() : () -> ()
    %cst_82 = arith.constant 0.353553385 : f32
    %275 = vector.broadcast %cst_82 : f32 to vector<2x8x8xf32>
    %276 = arith.mulf %274, %275 : vector<2x8x8xf32>
    %cst_83 = arith.constant dense<0xFF800000> : vector<2x8xf32>
    %277 = vector.multi_reduction <maximumf>, %276, %cst_83 [2] : vector<2x8x8xf32> to vector<2x8xf32>
    %278 = vector.shape_cast %277 : vector<2x8xf32> to vector<2x8x1xf32>
    %279 = vector.broadcast %278 : vector<2x8x1xf32> to vector<2x8x8xf32>
    %280 = arith.subf %276, %279 : vector<2x8x8xf32>
    %281 = math.exp %280 : vector<2x8x8xf32>
    %cst_84 = arith.constant dense<0.000000e+00> : vector<2x8xf32>
    %282 = vector.multi_reduction <add>, %281, %cst_84 [2] : vector<2x8x8xf32> to vector<2x8xf32>
    %283 = vector.shape_cast %282 : vector<2x8xf32> to vector<2x8x1xf32>
    %284 = tpu.reciprocal %283 {approx = true} : vector<2x8x1xf32> -> vector<2x8x1xf32>
    %285 = vector.broadcast %284 : vector<2x8x1xf32> to vector<2x8x8xf32>
    %286 = arith.mulf %281, %285 : vector<2x8x8xf32>
    %287 = arith.truncf %286 : vector<2x8x8xf32> to vector<2x8x8xbf16>
    "tpu.trace_start"() <{level = 10 : i32, message = "bqk,bkd->bqd"}> : () -> ()
    %cst_85 = arith.constant dense<0.000000e+00> : vector<2x8x8xf32>
    %288 = tpu.matmul %287, %273, %cst_85 {dimension_numbers = #tpu.dot_dimension_numbers<[2], [1], [1], [2], [0, 0, 0, 1, 1, 2], [0], [0]>} : vector<2x8x8xbf16>, vector<2x8x8xbf16>, vector<2x8x8xf32> -> vector<2x8x8xf32>
    "tpu.trace_stop"() : () -> ()
    %289 = vector.shape_cast %288 : vector<2x8x8xf32> to vector<16x8xf32>
    %290 = vector.extract_strided_slice %219 {offsets = [0, 0, 24], sizes = [2, 8, 8], strides = [1, 1, 1]} : vector<2x8x32xf32> to vector<2x8x8xf32>
    %291 = arith.truncf %290 : vector<2x8x8xf32> to vector<2x8x8xbf16>
    %292 = vector.extract_strided_slice %221 {offsets = [0, 0, 24], sizes = [2, 8, 8], strides = [1, 1, 1]} : vector<2x8x32xf32> to vector<2x8x8xf32>
    %293 = arith.truncf %292 : vector<2x8x8xf32> to vector<2x8x8xbf16>
    %294 = vector.extract_strided_slice %223 {offsets = [0, 0, 24], sizes = [2, 8, 8], strides = [1, 1, 1]} : vector<2x8x32xf32> to vector<2x8x8xf32>
    %295 = arith.truncf %294 : vector<2x8x8xf32> to vector<2x8x8xbf16>
    "tpu.trace_start"() <{level = 10 : i32, message = "bqd,bkd->bqk"}> : () -> ()
    %cst_86 = arith.constant dense<0.000000e+00> : vector<2x8x8xf32>
    %296 = tpu.matmul %291, %293, %cst_86 {dimension_numbers = #tpu.dot_dimension_numbers<[2], [2], [1], [1], [0, 0, 0, 1, 1, 1], [0], [0]>} : vector<2x8x8xbf16>, vector<2x8x8xbf16>, vector<2x8x8xf32> -> vector<2x8x8xf32>
    "tpu.trace_stop"() : () -> ()
    %cst_87 = arith.constant 0.353553385 : f32
    %297 = vector.broadcast %cst_87 : f32 to vector<2x8x8xf32>
    %298 = arith.mulf %296, %297 : vector<2x8x8xf32>
    %cst_88 = arith.constant dense<0xFF800000> : vector<2x8xf32>
    %299 = vector.multi_reduction <maximumf>, %298, %cst_88 [2] : vector<2x8x8xf32> to vector<2x8xf32>
    %300 = vector.shape_cast %299 : vector<2x8xf32> to vector<2x8x1xf32>
    %301 = vector.broadcast %300 : vector<2x8x1xf32> to vector<2x8x8xf32>
    %302 = arith.subf %298, %301 : vector<2x8x8xf32>
    %303 = math.exp %302 : vector<2x8x8xf32>
    %cst_89 = arith.constant dense<0.000000e+00> : vector<2x8xf32>
    %304 = vector.multi_reduction <add>, %303, %cst_89 [2] : vector<2x8x8xf32> to vector<2x8xf32>
    %305 = vector.shape_cast %304 : vector<2x8xf32> to vector<2x8x1xf32>
    %306 = tpu.reciprocal %305 {approx = true} : vector<2x8x1xf32> -> vector<2x8x1xf32>
    %307 = vector.broadcast %306 : vector<2x8x1xf32> to vector<2x8x8xf32>
    %308 = arith.mulf %303, %307 : vector<2x8x8xf32>
    %309 = arith.truncf %308 : vector<2x8x8xf32> to vector<2x8x8xbf16>
    "tpu.trace_start"() <{level = 10 : i32, message = "bqk,bkd->bqd"}> : () -> ()
    %cst_90 = arith.constant dense<0.000000e+00> : vector<2x8x8xf32>
    %310 = tpu.matmul %309, %295, %cst_90 {dimension_numbers = #tpu.dot_dimension_numbers<[2], [1], [1], [2], [0, 0, 0, 1, 1, 2], [0], [0]>} : vector<2x8x8xbf16>, vector<2x8x8xbf16>, vector<2x8x8xf32> -> vector<2x8x8xf32>
    "tpu.trace_stop"() : () -> ()
    %311 = vector.shape_cast %310 : vector<2x8x8xf32> to vector<16x8xf32>
    %312 = tpu.concatenate %245, %267, %289, %311 in 1 : vector<16x8xf32>, vector<16x8xf32>, vector<16x8xf32>, vector<16x8xf32> -> vector<16x32xf32>
    %313 = arith.truncf %312 : vector<16x32xf32> to vector<16x32xbf16>
    %c1_91 = arith.constant 1 : index
    %c0_92 = arith.constant 0 : index
    %c0_93 = arith.constant 0 : index
    %314 = vector.load %arg3[%c1_91, %c0_92, %c0_93] : memref<2x32x32xbf16, #tpu.memory_space<vmem>>, vector<1x32x32xbf16>
    %315 = vector.shape_cast %314 : vector<1x32x32xbf16> to vector<32x32xbf16>
    %cst_94 = arith.constant dense<0.000000e+00> : vector<16x32xf32>
    %316 = tpu.matmul %313, %315, %cst_94 {dimension_numbers = #tpu.dot_dimension_numbers<[1], [0], [0], [1], [0, 0, 1, 1], [], []>} : vector<16x32xbf16>, vector<32x32xbf16>, vector<16x32xf32> -> vector<16x32xf32>
    %c12 = arith.constant 12 : index
    %c0_95 = arith.constant 0 : index
    %317 = vector.load %arg1[%c12, %c0_95] : memref<24x128xf32, #tpu.memory_space<vmem>>, vector<1x32xf32>
    %318 = vector.broadcast %317 : vector<1x32xf32> to vector<16x32xf32>
    %319 = arith.addf %316, %318 : vector<16x32xf32>
    %320 = arith.addf %210, %319 : vector<16x32xf32>
    %c13 = arith.constant 13 : index
    %c0_96 = arith.constant 0 : index
    %321 = vector.load %arg1[%c13, %c0_96] : memref<24x128xf32, #tpu.memory_space<vmem>>, vector<1x32xf32>
    %c14 = arith.constant 14 : index
    %c0_97 = arith.constant 0 : index
    %322 = vector.load %arg1[%c14, %c0_97] : memref<24x128xf32, #tpu.memory_space<vmem>>, vector<1x32xf32>
    %cst_98 = arith.constant dense<0.000000e+00> : vector<16xf32>
    %323 = vector.multi_reduction <add>, %320, %cst_98 [1] : vector<16x32xf32> to vector<16xf32>
    %324 = vector.shape_cast %323 : vector<16xf32> to vector<16x1xf32>
    %cst_99 = arith.constant 3.200000e+01 : f32
    %325 = vector.broadcast %cst_99 : f32 to vector<16x1xf32>
    %326 = arith.divf %324, %325 : vector<16x1xf32>
    %327 = vector.broadcast %326 : vector<16x1xf32> to vector<16x32xf32>
    %328 = arith.subf %320, %327 : vector<16x32xf32>
    %329 = arith.mulf %328, %328 : vector<16x32xf32>
    %cst_100 = arith.constant dense<0.000000e+00> : vector<16xf32>
    %330 = vector.multi_reduction <add>, %329, %cst_100 [1] : vector<16x32xf32> to vector<16xf32>
    %331 = vector.shape_cast %330 : vector<16xf32> to vector<16x1xf32>
    %cst_101 = arith.constant 3.200000e+01 : f32
    %332 = vector.broadcast %cst_101 : f32 to vector<16x1xf32>
    %333 = arith.divf %331, %332 : vector<16x1xf32>
    %334 = vector.broadcast %326 : vector<16x1xf32> to vector<16x32xf32>
    %335 = arith.subf %320, %334 : vector<16x32xf32>
    %cst_102 = arith.constant 9.99999996E-13 : f32
    %336 = vector.broadcast %cst_102 : f32 to vector<16x1xf32>
    %337 = arith.addf %333, %336 : vector<16x1xf32>
    %338 = math.rsqrt %337 : vector<16x1xf32>
    %339 = vector.broadcast %338 : vector<16x1xf32> to vector<16x32xf32>
    %340 = arith.mulf %335, %339 : vector<16x32xf32>
    %341 = vector.broadcast %321 : vector<1x32xf32> to vector<16x32xf32>
    %342 = arith.mulf %340, %341 : vector<16x32xf32>
    %343 = vector.broadcast %322 : vector<1x32xf32> to vector<16x32xf32>
    %344 = arith.addf %342, %343 : vector<16x32xf32>
    %345 = arith.truncf %344 : vector<16x32xf32> to vector<16x32xbf16>
    %c1_103 = arith.constant 1 : index
    %c0_104 = arith.constant 0 : index
    %c0_105 = arith.constant 0 : index
    %346 = vector.load %arg4[%c1_103, %c0_104, %c0_105] : memref<2x32x64xbf16, #tpu.memory_space<vmem>>, vector<1x32x64xbf16>
    %347 = vector.shape_cast %346 : vector<1x32x64xbf16> to vector<32x64xbf16>
    %cst_106 = arith.constant dense<0.000000e+00> : vector<16x64xf32>
    %348 = tpu.matmul %345, %347, %cst_106 {dimension_numbers = #tpu.dot_dimension_numbers<[1], [0], [0], [1], [0, 0, 1, 1], [], []>} : vector<16x32xbf16>, vector<32x64xbf16>, vector<16x64xf32> -> vector<16x64xf32>
    %c15 = arith.constant 15 : index
    %c0_107 = arith.constant 0 : index
    %349 = vector.load %arg1[%c15, %c0_107] : memref<24x128xf32, #tpu.memory_space<vmem>>, vector<1x64xf32>
    %350 = vector.broadcast %349 : vector<1x64xf32> to vector<16x64xf32>
    %351 = arith.addf %348, %350 : vector<16x64xf32>
    %352 = arith.mulf %351, %351 : vector<16x64xf32>
    %353 = arith.mulf %351, %352 : vector<16x64xf32>
    %cst_108 = arith.constant 4.471500e-02 : f32
    %354 = vector.broadcast %cst_108 : f32 to vector<16x64xf32>
    %355 = arith.mulf %354, %353 : vector<16x64xf32>
    %356 = arith.addf %351, %355 : vector<16x64xf32>
    %cst_109 = arith.constant 0.797884583 : f32
    %357 = vector.broadcast %cst_109 : f32 to vector<16x64xf32>
    %358 = arith.mulf %357, %356 : vector<16x64xf32>
    %359 = math.tanh %358 : vector<16x64xf32>
    %cst_110 = arith.constant 1.000000e+00 : f32
    %360 = vector.broadcast %cst_110 : f32 to vector<16x64xf32>
    %361 = arith.addf %360, %359 : vector<16x64xf32>
    %cst_111 = arith.constant 5.000000e-01 : f32
    %362 = vector.broadcast %cst_111 : f32 to vector<16x64xf32>
    %363 = arith.mulf %362, %361 : vector<16x64xf32>
    %364 = arith.mulf %351, %363 : vector<16x64xf32>
    %365 = arith.truncf %364 : vector<16x64xf32> to vector<16x64xbf16>
    %c1_112 = arith.constant 1 : index
    %c0_113 = arith.constant 0 : index
    %c0_114 = arith.constant 0 : index
    %366 = vector.load %arg5[%c1_112, %c0_113, %c0_114] : memref<2x64x32xbf16, #tpu.memory_space<vmem>>, vector<1x64x32xbf16>
    %367 = vector.shape_cast %366 : vector<1x64x32xbf16> to vector<64x32xbf16>
    %cst_115 = arith.constant dense<0.000000e+00> : vector<16x32xf32>
    %368 = tpu.matmul %365, %367, %cst_115 {dimension_numbers = #tpu.dot_dimension_numbers<[1], [0], [0], [1], [0, 0, 1, 1], [], []>} : vector<16x64xbf16>, vector<64x32xbf16>, vector<16x32xf32> -> vector<16x32xf32>
    %c16 = arith.constant 16 : index
    %c0_116 = arith.constant 0 : index
    %369 = vector.load %arg1[%c16, %c0_116] : memref<24x128xf32, #tpu.memory_space<vmem>>, vector<1x32xf32>
    %370 = vector.broadcast %369 : vector<1x32xf32> to vector<16x32xf32>
    %371 = arith.addf %368, %370 : vector<16x32xf32>
    %372 = arith.addf %344, %371 : vector<16x32xf32>
    %c17 = arith.constant 17 : index
    %c0_117 = arith.constant 0 : index
    %373 = vector.load %arg1[%c17, %c0_117] : memref<24x128xf32, #tpu.memory_space<vmem>>, vector<1x32xf32>
    %c18 = arith.constant 18 : index
    %c0_118 = arith.constant 0 : index
    %374 = vector.load %arg1[%c18, %c0_118] : memref<24x128xf32, #tpu.memory_space<vmem>>, vector<1x32xf32>
    %cst_119 = arith.constant dense<0.000000e+00> : vector<16xf32>
    %375 = vector.multi_reduction <add>, %372, %cst_119 [1] : vector<16x32xf32> to vector<16xf32>
    %376 = vector.shape_cast %375 : vector<16xf32> to vector<16x1xf32>
    %cst_120 = arith.constant 3.200000e+01 : f32
    %377 = vector.broadcast %cst_120 : f32 to vector<16x1xf32>
    %378 = arith.divf %376, %377 : vector<16x1xf32>
    %379 = vector.broadcast %378 : vector<16x1xf32> to vector<16x32xf32>
    %380 = arith.subf %372, %379 : vector<16x32xf32>
    %381 = arith.mulf %380, %380 : vector<16x32xf32>
    %cst_121 = arith.constant dense<0.000000e+00> : vector<16xf32>
    %382 = vector.multi_reduction <add>, %381, %cst_121 [1] : vector<16x32xf32> to vector<16xf32>
    %383 = vector.shape_cast %382 : vector<16xf32> to vector<16x1xf32>
    %cst_122 = arith.constant 3.200000e+01 : f32
    %384 = vector.broadcast %cst_122 : f32 to vector<16x1xf32>
    %385 = arith.divf %383, %384 : vector<16x1xf32>
    %386 = vector.broadcast %378 : vector<16x1xf32> to vector<16x32xf32>
    %387 = arith.subf %372, %386 : vector<16x32xf32>
    %cst_123 = arith.constant 9.99999996E-13 : f32
    %388 = vector.broadcast %cst_123 : f32 to vector<16x1xf32>
    %389 = arith.addf %385, %388 : vector<16x1xf32>
    %390 = math.rsqrt %389 : vector<16x1xf32>
    %391 = vector.broadcast %390 : vector<16x1xf32> to vector<16x32xf32>
    %392 = arith.mulf %387, %391 : vector<16x32xf32>
    %393 = vector.broadcast %373 : vector<1x32xf32> to vector<16x32xf32>
    %394 = arith.mulf %392, %393 : vector<16x32xf32>
    %395 = vector.broadcast %374 : vector<1x32xf32> to vector<16x32xf32>
    %396 = arith.addf %394, %395 : vector<16x32xf32>
    %397 = vector.shape_cast %396 : vector<16x32xf32> to vector<2x8x32xf32>
    %398 = vector.extract_strided_slice %397 {offsets = [0, 0, 0], sizes = [2, 1, 32], strides = [1, 1, 1]} : vector<2x8x32xf32> to vector<2x1x32xf32>
    %399 = vector.shape_cast %398 : vector<2x1x32xf32> to vector<2x32xf32>
    %400 = arith.truncf %399 : vector<2x32xf32> to vector<2x32xbf16>
    %c0_124 = arith.constant 0 : index
    %c0_125 = arith.constant 0 : index
    %401 = vector.load %arg6[%c0_124, %c0_125] : memref<32x128xbf16, #tpu.memory_space<vmem>>, vector<32x128xbf16>
    %cst_126 = arith.constant dense<0.000000e+00> : vector<2x128xf32>
    %402 = tpu.matmul %400, %401, %cst_126 {dimension_numbers = #tpu.dot_dimension_numbers<[1], [0], [0], [1], [0, 0, 1, 1], [], []>} : vector<2x32xbf16>, vector<32x128xbf16>, vector<2x128xf32> -> vector<2x128xf32>
    %c2 = arith.constant 2 : index
    %c0_127 = arith.constant 0 : index
    %403 = vector.load %arg1[%c2, %c0_127] : memref<24x128xf32, #tpu.memory_space<vmem>>, vector<1x128xf32>
    %404 = vector.broadcast %403 : vector<1x128xf32> to vector<2x128xf32>
    %405 = arith.addf %402, %404 : vector<2x128xf32>
    %406 = tpu.iota {dimensions = array<i32: 1>} : vector<2x128xi32>
    %c3_i32 = arith.constant 3 : i32
    %407 = vector.broadcast %c3_i32 : i32 to vector<2x128xi32>
    %408 = arith.cmpi slt, %406, %407 : vector<2x128xi32>
    %cst_128 = arith.constant -1.000000e+30 : f32
    %409 = vector.broadcast %cst_128 : f32 to vector<2x128xf32>
    %410 = arith.select %408, %405, %409 : vector<2x128xi1>, vector<2x128xf32>
    %cst_129 = arith.constant dense<0xFF800000> : vector<2xf32>
    %411 = vector.multi_reduction <maximumf>, %410, %cst_129 [1] : vector<2x128xf32> to vector<2xf32>
    %412 = vector.shape_cast %411 : vector<2xf32> to vector<2x1xf32>
    %413 = vector.broadcast %412 : vector<2x1xf32> to vector<2x128xf32>
    %414 = arith.subf %410, %413 : vector<2x128xf32>
    %415 = math.exp %414 : vector<2x128xf32>
    %cst_130 = arith.constant dense<0.000000e+00> : vector<2xf32>
    %416 = vector.multi_reduction <add>, %415, %cst_130 [1] : vector<2x128xf32> to vector<2xf32>
    %417 = vector.shape_cast %416 : vector<2xf32> to vector<2x1xf32>
    %418 = math.log %417 : vector<2x1xf32>
    %419 = vector.broadcast %418 : vector<2x1xf32> to vector<2x128xf32>
    %420 = arith.subf %414, %419 : vector<2x128xf32>
    %c0_131 = arith.constant 0 : index
    %c0_132 = arith.constant 0 : index
    %421 = vector.load %arg7[%c0_131, %c0_132] : memref<2x128xf32, #tpu.memory_space<vmem>>, vector<2x128xf32>
    tpu.vector_store %arg7[%c0_131, %c0_132], %420 {strides = array<i32>} : memref<2x128xf32, #tpu.memory_space<vmem>>, vector<2x128xf32>,
    return
  }
}

</mosaic_0001>

<bundles_post_ra>
// kernel: pallas_forward.1
= control target key start
LH: loop header
LB: loop body
LE: loop exit
PB: predicated region body
PF: predicated region fallthrough
CT: control target
= control target key end

     0   :  { %vm32_vm0 = vcmask 261120   ;;  %s4057_s0 = inlined_call_operand.vmem [shape: f32[16,32], index: 0, kind: input, shape index: {}]   ;;  %s4058_s1 = inlined_call_operand.vmem [shape: f32[24,128], index: 1, kind: input, shape index: {}]   ;;  %s4059_s2 = inlined_call_operand.vmem [shape: bf16[2,32,96], index: 2, kind: input, shape index: {}]   ;;  %s4060_s3 = inlined_call_operand.vmem [shape: bf16[2,32,32], index: 3, kind: input, shape index: {}]   ;;  %s4061_s4 = inlined_call_operand.vmem [shape: bf16[2,32,64], index: 4, kind: input, shape index: {}]   ;;  %s4062_s5 = inlined_call_operand.vmem [shape: bf16[2,64,32], index: 5, kind: input, shape index: {}]   ;;  %s4063_s6 = inlined_call_operand.vmem [shape: bf16[32,128], index: 6, kind: input, shape index: {}]   ;;  %s4064_s7 = inlined_call_operand.hbm [shape: f32[2,128], index: 7, kind: output, shape index: {}]  }
   0x1   :  { %v28_v0 = vld [vmem:[%s4057_s0] sm:$0xff]  ;;  %v29_v1 = vld [vmem:[%s4057_s0 + $0x8] sm:$0xff] }
   0x2   :  { %v33_v2 = vsel %vm32_vm0, %v28_v0, 0.0  ;;  %v36_v3 = vsel %vm32_vm0, %v29_v1, 0.0 }
   0x3   :  { %34 = vadd.xlane.f32.xlu0 %v33_v2 }
   0x7   :  { %37 = vadd.xlane.f32.xlu0 %v36_v3 }
   0x8   :  { %12 = vsyncpa [#allocation3], 0  ;;  %v3303_v14 = vld [vmem:[%s4059_s2 + $0x8] sm:$0xff]   ;;  %v3443_v15 = vmov 0.0   ;;  %vm3444_vm1 = vmmov 0   ;;  %v3304_v16 = vld [vmem:[%s4059_s2] sm:$0xff]  }
   0x9   :  { %2984 = vmatprep.subr.bf16.mxu0 %v3443_v15  ;;  %2988 = vmatprep.mubr.msk.bf16.mxu0 %vm3444_vm1, %v3443_v15  ;;  %v2787_v25 = vld [vmem:[%s4058_s1] ss:$0 sm:$0xff]  ;;  %v2788_v29 = vld [vmem:[%s4058_s1 + $0x1] ss:$0 sm:$0xff]  ;;  %v2789_v34 = vld [vmem:[%s4058_s1 + $0x3] ss:$0 sm:$0xff] }
   0xa   :  { %2985 = vmatpush3.bf16.msra.mxu0 %v3303_v14  ;;  %2992 = vmatprep.subr.bf16.mxu1 %v3443_v15  ;;  %s3445_s14 = smov 96   ;;  %vm143_vm2 = vcmask 64512   ;;  %s3446_s15 = smov 64   ;;  %vm270_vm3 = vcmask 1043456   ;;  %vm1054_vm4 = vcmask 130048   ;;  %vm1057_vm5 = vcmask 195584  }
   0xb   :  { %2986 = vmatprep.subr.bf16.mxu0 %v3443_v15  ;;  %2994 = vmatprep.mubr.msk.bf16.mxu1 %vm3444_vm1, %v3443_v15  ;;  %s3447_s16 = smov 88   ;;  %s3448_s17 = smov 120   ;;  %vm1290_vm6 = vcmask 523264   ;;  %vm2697_vm7 = vcmask 1041409   ;;  %vm2759_vm9 = vcmask 1041408  }
   0xc   :  { %s3449_s18 = smov 56   ;;  %s3450_s19 = smov 80  }
   0xd   :  { %s3451_s20 = smov 112   ;;  %s3452_s21 = smov 48  }
   0xe   :  { %2987 = vmatpush3.bf16.msra.mxu0 %v3304_v16  ;;  %s3453_s22 = smov 72   ;;  %s3454_s23 = smov 104  }
   0xf   :  { %2998 = vmatprep.subr.bf16.mxu0 %v3443_v15  ;;  %s3455_s24 = smov 40   ;;  %s3456_s25 = smov 8  }
  0x10   :  { %s3457_s26 = smov 16   ;;  %s3458_s30 = smov 24  }
  0x8c   :  { %v35_v4 = vpop.xlane.xlu0 %34 }
  0x8d   :  { %v40_v5 = vmul.f32 0.03125, %v35_v4 }
  0x8f   :  { %v42_v6 = vsub.f32 %v28_v0, %v40_v5 }
  0x90   :  { %v38_v7 = vpop.xlane.xlu0 %37 }
  0x91   :  { %v41_v8 = vmul.f32 0.03125, %v38_v7  ;;  %v44_v9 = vmul.f32 %v42_v6, %v42_v6 }
  0x93   :  { %v43_v10 = vsub.f32 %v29_v1, %v41_v8  ;;  %v46_v11 = vsel %vm32_vm0, %v44_v9, 0.0 }
  0x94   :  { %47 = vadd.xlane.f32.xlu1 %v46_v11 }
  0x95   :  { %v45_v12 = vmul.f32 %v43_v10, %v43_v10 }
  0x97   :  { %v49_v13 = vsel %vm32_vm0, %v45_v12, 0.0 }
  0x98   :  { %50 = vadd.xlane.f32.xlu1 %v49_v13 }
 0x11d   :  { %v48_v17 = vpop.xlane.xlu1 %47 }
 0x11e   :  { %v52_v18 = vmul.f32 0.03125, %v48_v17 }
 0x120   :  { %v54_v19 = vadd.f32 1e-12, %v52_v18 }
 0x121   :  { %v51_v20 = vpop.xlane.xlu1 %50 }
 0x122   :  { %3325 = vrsqrt.f32 %v54_v19  ;;  %v53_v21 = vmul.f32 0.03125, %v51_v20 }
 0x124   :  { %v55_v22 = vadd.f32 1e-12, %v53_v21 }
 0x126   :  { %3327 = vrsqrt.f32 %v55_v22 }
 0x12f   :  { %v3326_v23 = vpop.eup %3325 }
 0x130   :  { %v58_v24 = vmul.f32 %v3326_v23, %v42_v6 }
 0x132   :  { %v64_v28 = vmul.f32 %v2787_v25, %v58_v24 }
 0x133   :  { %v3328_v26 = vpop.eup %3327 }
 0x134   :  { %v59_v27 = vmul.f32 %v3328_v26, %v43_v10  ;;  %v3530_v31 = vadd.f32 %v2788_v29, %v64_v28 }
 0x136   :  { %v65_v30 = vmul.f32 %v2787_v25, %v59_v27 }
 0x138   :  { %v3532_v32 = vadd.f32 %v2788_v29, %v65_v30 }
 0x13a   :  { %v72_v33 = vpack.c.bf16 %v3532_v32, %v3530_v31 }
 0x13c   :  { %2989 = vmatmul.mubr.msk.bf16.vlgmr.msra.gmra.mxu0 %vm32_vm0, %v72_v33 }
 0x13d   :  { %3000 = vmatprep.mubr.msk.bf16.mxu0 %vm3444_vm1, %v3443_v15 }
 0x1fc   :  { %v131_v35 = vpop.f32.mrf.mxu0 }
 0x1fd   :  { %v132_v36 = vadd.f32 %v2789_v34, %v131_v35 }
 0x1fe   :  { %v2990_v37 = vpop.f32.mrf.mxu0 }
 0x1ff   :  { %v3542_v38 = vpack.c.bf16 %v132_v36, %v132_v36 }
 0x200   :  { %v134_v39 = vpop.f32.mrf.mxu0 }
 0x201   :  { %v135_v40 = vadd.f32 %v2789_v34, %v134_v39  ;;  %141 = vrot.lane.b32.xlu0 %v3542_v38, %s3445_s14 }
 0x202   :  { %v2991_v41 = vpop.f32.mrf.mxu0 }
 0x203   :  { %v3546_v42 = vpack.c.bf16 %v135_v40, %v135_v40 }
 0x205   :  { %191 = vrot.lane.b32.xlu1 %v3546_v42, %s3445_s14 }
 0x273   :  { %v142_v43 = vpop.permute.xlu0 %141 }
 0x274   :  { %v148_v44 = vsel %vm143_vm2, %v142_v43, 0 }
 0x275   :  { %2993 = vmatpush3.bf16.xpose.msra.mxu1 %v148_v44 }
 0x276   :  { %3004 = vmatprep.subr.bf16.mxu1 %v3443_v15 }
 0x277   :  { %v192_v45 = vpop.permute.xlu1 %191 }
 0x278   :  { %v197_v46 = vsel %vm143_vm2, %v192_v45, 0 }
 0x279   :  { %2999 = vmatpush3.bf16.xpose.msra.mxu0 %v197_v46 }
 0x27a   :  { %3010 = vmatprep.subr.bf16.mxu0 %v3443_v15 }
 0x27c   :  { %2995 = vmatmul.mubr.msk.bf16.vlgmr.msra.gmra.mxu1 %vm143_vm2, %v3542_v38 }
 0x27d   :  { %3006 = vmatprep.mubr.msk.bf16.mxu1 %vm3444_vm1, %v3443_v15 }
 0x280   :  { %3001 = vmatmul.mubr.msk.bf16.vlgmr.msra.gmra.mxu0 %vm143_vm2, %v3546_v42 }
 0x281   :  { %3012 = vmatprep.mubr.msk.bf16.mxu0 %vm3444_vm1, %v3443_v15 }
 0x33c   :  { %v184_v47 = vpop.f32.mrf.mxu1 }
 0x33d   :  { %v239_v48 = vmul.f32 0.35355338, %v184_v47 }
 0x33e   :  { %v2996_v49 = vpop.f32.mrf.mxu1 }
 0x33f   :  { %v241_v50 = vsel %vm143_vm2, %v239_v48, -inf }
 0x340   :  { %v187_v51 = vpop.f32.mrf.mxu1  ;;  %242 = vmax.xlane.f32.xlu1 %v241_v50  ;;  %v233_v52 = vpop.f32.mrf.mxu0 }
 0x341   :  { %v240_v53 = vmul.f32 0.35355338, %v233_v52 }
 0x342   :  { %v2997_v54 = vpop.f32.mrf.mxu1  ;;  %v3002_v55 = vpop.f32.mrf.mxu0 }
 0x343   :  { %v244_v56 = vsel %vm143_vm2, %v240_v53, -inf }
 0x344   :  { %245 = vmax.xlane.f32.xlu0 %v244_v56  ;;  %v236_v57 = vpop.f32.mrf.mxu0 }
 0x346   :  { %v3003_v58 = vpop.f32.mrf.mxu0 }
 0x351   :  { %314 = vrot.lane.b32.xlu1 %v3546_v42, %s3446_s15 }
 0x355   :  { %364 = vrot.lane.b32.xlu1 %v3542_v38, %s3447_s16 }
 0x3c9   :  { %v243_v59 = vpop.xlane.xlu1 %242 }
 0x3ca   :  { %v247_v60 = vsub.f32 %v239_v48, %v243_v59 }
 0x3cc   :  { %v249_v61 = vmul.f32 1.442695, %v247_v60 }
 0x3cd   :  { %v315_v62 = vpop.permute.xlu1 %314  ;;  %v246_v63 = vpop.xlane.xlu0 %245 }
 0x3ce   :  { %3329 = vpow2.f32 %v249_v61  ;;  %v320_v0 = vsel %vm270_vm3, %v315_v62, 0  ;;  %v248_v1 = vsub.f32 %v240_v53, %v246_v63 }
 0x3cf   :  { %3011 = vmatpush3.bf16.msra.mxu0 %v320_v0 }
 0x3d0   :  { %v251_v2 = vmul.f32 1.442695, %v248_v1  ;;  %3022 = vmatprep.subr.bf16.mxu0 %v3443_v15 }
 0x3d1   :  { %v365_v7 = vpop.permute.xlu1 %364 }
 0x3d2   :  { %3331 = vpow2.f32 %v251_v2  ;;  %v370_v17 = vsel %vm143_vm2, %v365_v7, 0 }
 0x3db   :  { %v3330_v3 = vpop.eup %3329 }
 0x3dc   :  { %v253_v4 = vsel %vm143_vm2, %v3330_v3, 0.0 }
 0x3dd   :  { %254 = vadd.xlane.f32.xlu0 %v253_v4 }
 0x3df   :  { %v3332_v5 = vpop.eup %3331 }
 0x3e0   :  { %v256_v6 = vsel %vm143_vm2, %v3332_v5, 0.0 }
 0x3e1   :  { %257 = vadd.xlane.f32.xlu1 %v256_v6 }
 0x3f2   :  { %414 = vrot.lane.b32.xlu1 %v3546_v42, %s3447_s16 }
 0x3f3   :  { %265 = vrot.lane.b32.xlu0 %v3542_v38, %s3446_s15 }
 0x3f6   :  { %412 = vrot.lane.b32.xlu1 %v3546_v42, %s3448_s17 }
 0x3f7   :  { %362 = vrot.lane.b32.xlu0 %v3542_v38, %s3448_s17 }
 0x466   :  { %v255_v8 = vpop.xlane.xlu0 %254 }
 0x467   :  { %3333 = vrcp.f32 %v255_v8 }
 0x46a   :  { %v258_v9 = vpop.xlane.xlu1 %257  ;;  %v266_v10 = vpop.permute.xlu0 %265 }
 0x46b   :  { %3335 = vrcp.f32 %v258_v9  ;;  %v272_v11 = vsel %vm270_vm3, %v266_v10, 0 }
 0x46c   :  { %3005 = vmatpush3.bf16.msra.mxu1 %v272_v11 }
 0x46d   :  { %3016 = vmatprep.subr.bf16.mxu1 %v3443_v15 }
 0x46e   :  { %v415_v19 = vpop.permute.xlu1 %414  ;;  %v363_v22 = vpop.permute.xlu0 %362 }
 0x46f   :  { %v420_v21 = vsel %vm143_vm2, %v415_v19, 0 }
 0x472   :  { %v413_v23 = vpop.permute.xlu1 %412 }
 0x474   :  { %v3334_v12 = vpop.eup %3333 }
 0x475   :  { %v261_v13 = vmul.f32 %v3334_v12, %v3330_v3 }
 0x477   :  { %v263_v14 = vpack.c.bf16 %v261_v13, %v261_v13 }
 0x478   :  { %v3336_v16 = vpop.eup %3335 }
 0x479   :  { %3007 = vmatmul.mubr.msk.bf16.vlgmr.msra.gmra.mxu1 %vm143_vm2, %v263_v14  ;;  %v262_v18 = vmul.f32 %v3336_v16, %v3332_v5 }
 0x47a   :  { %3017 = vmatpush3.bf16.xpose.msra.mxu1 %v370_v17  ;;  %3018 = vmatprep.mubr.msk.bf16.mxu1 %vm3444_vm1, %v3443_v15 }
 0x47b   :  { %v264_v20 = vpack.c.bf16 %v262_v18, %v262_v18  ;;  %3028 = vmatprep.subr.bf16.mxu1 %v3443_v15 }
 0x47d   :  { %3013 = vmatmul.mubr.msk.bf16.vlgmr.msra.gmra.mxu0 %vm143_vm2, %v264_v20 }
 0x47e   :  { %3023 = vmatpush3.bf16.xpose.msra.mxu0 %v420_v21  ;;  %3024 = vmatprep.mubr.msk.bf16.mxu0 %vm3444_vm1, %v3443_v15 }
 0x47f   :  { %3034 = vmatprep.subr.bf16.mxu0 %v3443_v15 }
 0x481   :  { %3019 = vmatmul.mubr.msk.bf16.vlgmr.msra.gmra.mxu1 %vm143_vm2, %v363_v22 }
 0x482   :  { %3030 = vmatprep.mubr.msk.bf16.mxu1 %vm3444_vm1, %v3443_v15 }
 0x485   :  { %3025 = vmatmul.mubr.msk.bf16.vlgmr.msra.gmra.mxu0 %vm143_vm2, %v413_v23 }
 0x486   :  { %3036 = vmatprep.mubr.msk.bf16.mxu0 %vm3444_vm1, %v3443_v15 }
 0x539   :  { %v3598_v24 = vpop.f32.mrf.mxu1 }
 0x53b   :  { %v3008_v25 = vpop.f32.mrf.mxu1 }
 0x53d   :  { %v311_v26 = vpop.f32.mrf.mxu1  ;;  %v3600_v27 = vpop.f32.mrf.mxu0 }
 0x53f   :  { %v3009_v28 = vpop.f32.mrf.mxu1  ;;  %v3014_v29 = vpop.f32.mrf.mxu0 }
 0x541   :  { %v359_v30 = vpop.f32.mrf.mxu0  ;;  %v406_v33 = vpop.f32.mrf.mxu1 }
 0x542   :  { %v462_v34 = vmul.f32 0.35355338, %v406_v33 }
 0x543   :  { %v3015_v35 = vpop.f32.mrf.mxu0  ;;  %v3020_v36 = vpop.f32.mrf.mxu1 }
 0x544   :  { %v464_v37 = vsel %vm143_vm2, %v462_v34, -inf }
 0x545   :  { %465 = vmax.xlane.f32.xlu0 %v464_v37  ;;  %v409_v39 = vpop.f32.mrf.mxu1  ;;  %v456_v40 = vpop.f32.mrf.mxu0 }
 0x546   :  { %v463_v41 = vmul.f32 0.35355338, %v456_v40 }
 0x547   :  { %v3021_v43 = vpop.f32.mrf.mxu1  ;;  %v3026_v44 = vpop.f32.mrf.mxu0 }
 0x548   :  { %v467_v45 = vsel %vm143_vm2, %v463_v41, -inf }
 0x549   :  { %468 = vmax.xlane.f32.xlu1 %v467_v45  ;;  %v459_v46 = vpop.f32.mrf.mxu0 }
 0x54b   :  { %v3027_v47 = vpop.f32.mrf.mxu0 }
 0x55a   :  { %536 = vrot.lane.b32.xlu1 %v3546_v42, %s3449_s18 }
 0x55e   :  { %586 = vrot.lane.b32.xlu1 %v3542_v38, %s3450_s19 }
 0x562   :  { %636 = vrot.lane.b32.xlu1 %v3546_v42, %s3450_s19 }
 0x566   :  { %634 = vrot.lane.b32.xlu1 %v3546_v42, %s3451_s20 }
 0x5ce   :  { %v466_v48 = vpop.xlane.xlu0 %465 }
 0x5cf   :  { %v470_v49 = vsub.f32 %v462_v34, %v466_v48 }
 0x5d1   :  { %v472_v50 = vmul.f32 1.442695, %v470_v49 }
 0x5d2   :  { %v469_v51 = vpop.xlane.xlu1 %468 }
 0x5d3   :  { %3337 = vpow2.f32 %v472_v50  ;;  %v471_v52 = vsub.f32 %v463_v41, %v469_v51 }
 0x5d5   :  { %v474_v53 = vmul.f32 1.442695, %v471_v52 }
 0x5d6   :  { %v537_v54 = vpop.permute.xlu1 %536 }
 0x5d7   :  { %3339 = vpow2.f32 %v474_v53  ;;  %v542_v55 = vsel %vm270_vm3, %v537_v54, 0 }
 0x5d8   :  { %3035 = vmatpush3.bf16.msra.mxu0 %v542_v55 }
 0x5d9   :  { %3046 = vmatprep.subr.bf16.mxu0 %v3443_v15 }
 0x5da   :  { %v587_v1 = vpop.permute.xlu1 %586 }
 0x5db   :  { %v592_v5 = vsel %vm143_vm2, %v587_v1, 0 }
 0x5de   :  { %v637_v7 = vpop.permute.xlu1 %636 }
 0x5df   :  { %v642_v9 = vsel %vm143_vm2, %v637_v7, 0 }
 0x5e0   :  { %v3338_v56 = vpop.eup %3337 }
 0x5e1   :  { %v476_v57 = vsel %vm143_vm2, %v3338_v56, 0.0 }
 0x5e2   :  { %477 = vadd.xlane.f32.xlu0 %v476_v57  ;;  %v635_v11 = vpop.permute.xlu1 %634 }
 0x5e4   :  { %v3340_v58 = vpop.eup %3339 }
 0x5e5   :  { %v479_v59 = vsel %vm143_vm2, %v3340_v58, 0.0 }
 0x5e6   :  { %480 = vadd.xlane.f32.xlu0 %v479_v59 }
 0x5fc   :  { %488 = vrot.lane.b32.xlu0 %v3542_v38, %s3449_s18 }
 0x600   :  { %584 = vrot.lane.b32.xlu0 %v3542_v38, %s3451_s20 }
 0x66b   :  { %v478_v60 = vpop.xlane.xlu0 %477 }
 0x66c   :  { %3341 = vrcp.f32 %v478_v60 }
 0x66f   :  { %v481_v61 = vpop.xlane.xlu0 %480 }
 0x670   :  { %3343 = vrcp.f32 %v481_v61 }
 0x673   :  { %v489_v62 = vpop.permute.xlu0 %488 }
 0x674   :  { %v494_v63 = vsel %vm270_vm3, %v489_v62, 0 }
 0x675   :  { %3029 = vmatpush3.bf16.msra.mxu1 %v494_v63 }
 0x676   :  { %3040 = vmatprep.subr.bf16.mxu1 %v3443_v15 }
 0x677   :  { %v585_v10 = vpop.permute.xlu0 %584 }
 0x679   :  { %v3342_v0 = vpop.eup %3341 }
 0x67a   :  { %v484_v2 = vmul.f32 %v3342_v0, %v3338_v56 }
 0x67c   :  { %v486_v3 = vpack.c.bf16 %v484_v2, %v484_v2 }
 0x67d   :  { %v3344_v4 = vpop.eup %3343 }
 0x67e   :  { %3031 = vmatmul.mubr.msk.bf16.vlgmr.msra.gmra.mxu1 %vm143_vm2, %v486_v3  ;;  %v485_v6 = vmul.f32 %v3344_v4, %v3340_v58 }
 0x67f   :  { %3041 = vmatpush3.bf16.xpose.msra.mxu1 %v592_v5  ;;  %3042 = vmatprep.mubr.msk.bf16.mxu1 %vm3444_vm1, %v3443_v15 }
 0x680   :  { %v487_v8 = vpack.c.bf16 %v485_v6, %v485_v6  ;;  %3052 = vmatprep.subr.bf16.mxu1 %v3443_v15 }
 0x682   :  { %3037 = vmatmul.mubr.msk.bf16.vlgmr.msra.gmra.mxu0 %vm143_vm2, %v487_v8 }
 0x683   :  { %3047 = vmatpush3.bf16.xpose.msra.mxu0 %v642_v9  ;;  %3048 = vmatprep.mubr.msk.bf16.mxu0 %vm3444_vm1, %v3443_v15 }
 0x684   :  { %3058 = vmatprep.subr.bf16.mxu0 %v3443_v15 }
 0x686   :  { %3043 = vmatmul.mubr.msk.bf16.vlgmr.msra.gmra.mxu1 %vm143_vm2, %v585_v10 }
 0x687   :  { %3054 = vmatprep.mubr.msk.bf16.mxu1 %vm3444_vm1, %v3443_v15 }
 0x68a   :  { %3049 = vmatmul.mubr.msk.bf16.vlgmr.msra.gmra.mxu0 %vm143_vm2, %v635_v11 }
 0x68b   :  { %3060 = vmatprep.mubr.msk.bf16.mxu0 %vm3444_vm1, %v3443_v15 }
 0x73e   :  { %v3638_v12 = vpop.f32.mrf.mxu1 }
 0x740   :  { %v3032_v13 = vpop.f32.mrf.mxu1 }
 0x742   :  { %v533_v14 = vpop.f32.mrf.mxu1  ;;  %v3640_v16 = vpop.f32.mrf.mxu0 }
 0x743   :  { %v3273_v17 = vpack.i.bf16 %v3640_v16, %v3638_v12 }
 0x744   :  { %v3033_v18 = vpop.f32.mrf.mxu1  ;;  %v3038_v19 = vpop.f32.mrf.mxu0 }
 0x746   :  { %v581_v20 = vpop.f32.mrf.mxu0  ;;  %v628_v21 = vpop.f32.mrf.mxu1 }
 0x747   :  { %v684_v22 = vmul.f32 0.35355338, %v628_v21 }
 0x748   :  { %v3039_v23 = vpop.f32.mrf.mxu0  ;;  %v3044_v25 = vpop.f32.mrf.mxu1 }
 0x749   :  { %v686_v26 = vsel %vm143_vm2, %v684_v22, -inf }
 0x74a   :  { %687 = vmax.xlane.f32.xlu0 %v686_v26  ;;  %v631_v28 = vpop.f32.mrf.mxu1  ;;  %v678_v29 = vpop.f32.mrf.mxu0 }
 0x74b   :  { %v685_v30 = vmul.f32 0.35355338, %v678_v29 }
 0x74c   :  { %v3045_v33 = vpop.f32.mrf.mxu1  ;;  %v3050_v34 = vpop.f32.mrf.mxu0 }
 0x74d   :  { %v689_v35 = vsel %vm143_vm2, %v685_v30, -inf }
 0x74e   :  { %690 = vmax.xlane.f32.xlu1 %v689_v35  ;;  %v681_v36 = vpop.f32.mrf.mxu0 }
 0x750   :  { %v3051_v37 = vpop.f32.mrf.mxu0 }
 0x75f   :  { %758 = vrot.lane.b32.xlu1 %v3546_v42, %s3452_s21 }
 0x763   :  { %808 = vrot.lane.b32.xlu1 %v3542_v38, %s3453_s22 }
 0x767   :  { %858 = vrot.lane.b32.xlu1 %v3546_v42, %s3453_s22 }
 0x76b   :  { %856 = vrot.lane.b32.xlu1 %v3546_v42, %s3454_s23 }
 0x7d3   :  { %v688_v39 = vpop.xlane.xlu0 %687 }
 0x7d4   :  { %v692_v40 = vsub.f32 %v684_v22, %v688_v39 }
 0x7d6   :  { %v694_v41 = vmul.f32 1.442695, %v692_v40 }
 0x7d7   :  { %v691_v43 = vpop.xlane.xlu1 %690 }
 0x7d8   :  { %3345 = vpow2.f32 %v694_v41  ;;  %v693_v44 = vsub.f32 %v685_v30, %v691_v43 }
 0x7da   :  { %v696_v45 = vmul.f32 1.442695, %v693_v44 }
 0x7db   :  { %v759_v46 = vpop.permute.xlu1 %758 }
 0x7dc   :  { %3347 = vpow2.f32 %v696_v45  ;;  %v764_v47 = vsel %vm270_vm3, %v759_v46, 0 }
 0x7dd   :  { %3059 = vmatpush3.bf16.msra.mxu0 %v764_v47 }
 0x7de   :  { %3070 = vmatprep.subr.bf16.mxu0 %v3443_v15 }
 0x7df   :  { %v809_v57 = vpop.permute.xlu1 %808 }
 0x7e0   :  { %v814_v61 = vsel %vm143_vm2, %v809_v57, 0 }
 0x7e3   :  { %v859_v63 = vpop.permute.xlu1 %858 }
 0x7e4   :  { %v864_v1 = vsel %vm143_vm2, %v859_v63, 0 }
 0x7e5   :  { %v3346_v48 = vpop.eup %3345 }
 0x7e6   :  { %v698_v49 = vsel %vm143_vm2, %v3346_v48, 0.0 }
 0x7e7   :  { %699 = vadd.xlane.f32.xlu0 %v698_v49  ;;  %v857_v3 = vpop.permute.xlu1 %856 }
 0x7e9   :  { %v3348_v50 = vpop.eup %3347 }
 0x7ea   :  { %v701_v51 = vsel %vm143_vm2, %v3348_v50, 0.0 }
 0x7eb   :  { %702 = vadd.xlane.f32.xlu0 %v701_v51 }
 0x801   :  { %710 = vrot.lane.b32.xlu0 %v3542_v38, %s3452_s21 }
 0x805   :  { %806 = vrot.lane.b32.xlu0 %v3542_v38, %s3454_s23 }
 0x870   :  { %v700_v52 = vpop.xlane.xlu0 %699 }
 0x871   :  { %3349 = vrcp.f32 %v700_v52  ;;  %v3305_v52 = vld [vmem:[%s4060_s3 + $0x8] sm:$0xff]  }
 0x874   :  { %v703_v53 = vpop.xlane.xlu0 %702 }
 0x875   :  { %3351 = vrcp.f32 %v703_v53  ;;  %v3306_v53 = vld [vmem:[%s4060_s3] sm:$0xff]  }
 0x878   :  { %v711_v54 = vpop.permute.xlu0 %710 }
 0x879   :  { %v716_v55 = vsel %vm270_vm3, %v711_v54, 0 }
 0x87a   :  { %3053 = vmatpush3.bf16.msra.mxu1 %v716_v55 }
 0x87b   :  { %3064 = vmatprep.subr.bf16.mxu1 %v3443_v15 }
 0x87c   :  { %v807_v2 = vpop.permute.xlu0 %806 }
 0x87e   :  { %v3350_v56 = vpop.eup %3349 }
 0x87f   :  { %v706_v58 = vmul.f32 %v3350_v56, %v3346_v48 }
 0x881   :  { %v708_v59 = vpack.c.bf16 %v706_v58, %v706_v58 }
 0x882   :  { %v3352_v60 = vpop.eup %3351 }
 0x883   :  { %3055 = vmatmul.mubr.msk.bf16.vlgmr.msra.gmra.mxu1 %vm143_vm2, %v708_v59  ;;  %v707_v62 = vmul.f32 %v3352_v60, %v3348_v50 }
 0x884   :  { %3065 = vmatpush3.bf16.xpose.msra.mxu1 %v814_v61  ;;  %3066 = vmatprep.mubr.msk.bf16.mxu1 %vm3444_vm1, %v3443_v15 }
 0x885   :  { %v709_v0 = vpack.c.bf16 %v707_v62, %v707_v62  ;;  %3076 = vmatprep.subr.bf16.mxu1 %v3443_v15 }
 0x887   :  { %3061 = vmatmul.mubr.msk.bf16.vlgmr.msra.gmra.mxu0 %vm143_vm2, %v709_v0 }
 0x888   :  { %3071 = vmatpush3.bf16.xpose.msra.mxu0 %v864_v1  ;;  %3072 = vmatprep.mubr.msk.bf16.mxu0 %vm3444_vm1, %v3443_v15 }
 0x889   :  { %3082 = vmatprep.subr.bf16.mxu0 %v3443_v15 }
 0x88b   :  { %3067 = vmatmul.mubr.msk.bf16.vlgmr.msra.gmra.mxu1 %vm143_vm2, %v807_v2 }
 0x88c   :  { %3078 = vmatprep.mubr.msk.bf16.mxu1 %vm3444_vm1, %v3443_v15 }
 0x88f   :  { %3073 = vmatmul.mubr.msk.bf16.vlgmr.msra.gmra.mxu0 %vm143_vm2, %v857_v3 }
 0x890   :  { %3084 = vmatprep.mubr.msk.bf16.mxu0 %vm3444_vm1, %v3443_v15 }
 0x943   :  { %v752_v4 = vpop.f32.mrf.mxu1 }
 0x945   :  { %v3056_v5 = vpop.f32.mrf.mxu1 }
 0x947   :  { %v755_v6 = vpop.f32.mrf.mxu1  ;;  %v800_v7 = vpop.f32.mrf.mxu0 }
 0x948   :  { %v3278_v30 = vpack.i.bf16 %v800_v7, %v752_v4 }
 0x949   :  { %v3057_v8 = vpop.f32.mrf.mxu1  ;;  %v3062_v9 = vpop.f32.mrf.mxu0 }
 0x94b   :  { %v803_v10 = vpop.f32.mrf.mxu0  ;;  %v850_v11 = vpop.f32.mrf.mxu1 }
 0x94c   :  { %v906_v13 = vmul.f32 0.35355338, %v850_v11 }
 0x94d   :  { %v3063_v14 = vpop.f32.mrf.mxu0  ;;  %v3068_v18 = vpop.f32.mrf.mxu1 }
 0x94e   :  { %v908_v19 = vsel %vm143_vm2, %v906_v13, -inf }
 0x94f   :  { %909 = vmax.xlane.f32.xlu0 %v908_v19  ;;  %v853_v20 = vpop.f32.mrf.mxu1  ;;  %v900_v21 = vpop.f32.mrf.mxu0 }
 0x950   :  { %v907_v22 = vmul.f32 0.35355338, %v900_v21 }
 0x951   :  { %v3069_v23 = vpop.f32.mrf.mxu1  ;;  %v3074_v25 = vpop.f32.mrf.mxu0 }
 0x952   :  { %v911_v26 = vsel %vm143_vm2, %v907_v22, -inf }
 0x953   :  { %912 = vmax.xlane.f32.xlu1 %v911_v26  ;;  %v903_v28 = vpop.f32.mrf.mxu0 }
 0x955   :  { %v3075_v29 = vpop.f32.mrf.mxu0 }
 0x964   :  { %980 = vrot.lane.b32.xlu1 %v3546_v42, %s3455_s24 }
 0x968   :  { %3274 = vrot.lane.b32.xlu1 %v3273_v17, %s3456_s25 }
 0x96c   :  { %3279 = vrot.lane.b32.xlu1 %v3278_v30, %s3457_s26 }
 0x9d8   :  { %v910_v33 = vpop.xlane.xlu0 %909 }
 0x9d9   :  { %v914_v34 = vsub.f32 %v906_v13, %v910_v33 }
 0x9db   :  { %v916_v35 = vmul.f32 1.442695, %v914_v34 }
 0x9dc   :  { %v913_v36 = vpop.xlane.xlu1 %912 }
 0x9dd   :  { %3353 = vpow2.f32 %v916_v35  ;;  %v915_v37 = vsub.f32 %v907_v22, %v913_v36 }
 0x9df   :  { %v918_v39 = vmul.f32 1.442695, %v915_v37 }
 0x9e0   :  { %v981_v40 = vpop.permute.xlu1 %980 }
 0x9e1   :  { %3355 = vpow2.f32 %v918_v39  ;;  %v986_v42 = vsel %vm270_vm3, %v981_v40, 0 }
 0x9e2   :  { %3083 = vmatpush3.bf16.msra.mxu0 %v986_v42 }
 0x9e3   :  { %3096 = vmatprep.subr.bf16.mxu0 %v3443_v15 }
 0x9e4   :  { %v3275_v63 = vpop.permute.xlu1 %3274 }
 0x9e5   :  { %v3277_v1 = vunpack.i.h.bf16 %v3275_v63  ;;  %v3276_v2 = vunpack.i.l.bf16 %v3275_v63 }
 0x9e7   :  { %v1053_v6 = vsel %vm143_vm2, %v3600_v27, %v3277_v1  ;;  %v1052_v7 = vsel %vm143_vm2, %v3598_v24, %v3276_v2  ;;  %v2809_v24 = vld [vmem:[%s4058_s1 + $0x4] ss:$0 sm:$0xff] }
 0x9e8   :  { %v3280_v0 = vpop.permute.xlu1 %3279 }
 0x9e9   :  { %v3282_v3 = vunpack.i.h.bf16 %v3280_v0  ;;  %v3281_v4 = vunpack.i.l.bf16 %v3280_v0 }
 0x9ea   :  { %v3354_v12 = vpop.eup %3353 }
 0x9eb   :  { %v920_v16 = vsel %vm143_vm2, %v3354_v12, 0.0  ;;  %v1055_v10 = vsel %vm1054_vm4, %v1052_v7, %v3281_v4  ;;  %v1056_v11 = vsel %vm1054_vm4, %v1053_v6, %v3282_v3 }
 0x9ec   :  { %921 = vadd.xlane.f32.xlu0 %v920_v16 }
 0x9ee   :  { %v3356_v17 = vpop.eup %3355 }
 0x9ef   :  { %v923_v41 = vsel %vm143_vm2, %v3356_v17, 0.0 }
 0x9f0   :  { %924 = vadd.xlane.f32.xlu0 %v923_v41 }
 0xa06   :  { %932 = vrot.lane.b32.xlu0 %v3542_v38, %s3455_s24 }
 0xa75   :  { %v922_v43 = vpop.xlane.xlu0 %921 }
 0xa76   :  { %3357 = vrcp.f32 %v922_v43 }
 0xa79   :  { %v925_v44 = vpop.xlane.xlu0 %924 }
 0xa7a   :  { %3359 = vrcp.f32 %v925_v44 }
 0xa7d   :  { %v933_v45 = vpop.permute.xlu0 %932 }
 0xa7e   :  { %v938_v46 = vsel %vm270_vm3, %v933_v45, 0 }
 0xa7f   :  { %3077 = vmatpush3.bf16.msra.mxu1 %v938_v46 }
 0xa80   :  { %3088 = vmatprep.subr.bf16.mxu1 %v3443_v15 }
 0xa83   :  { %v3358_v47 = vpop.eup %3357 }
 0xa84   :  { %v928_v48 = vmul.f32 %v3358_v47, %v3354_v12  ;;  %v3308_v12 = vld [vmem:[%s4061_s4] sm:$0xff]  }
 0xa86   :  { %v930_v49 = vpack.c.bf16 %v928_v48, %v928_v48  ;;  %v2813_v48 = vld [vmem:[%s4058_s1 + $0x5] ss:$0 sm:$0xff] }
 0xa87   :  { %v3360_v50 = vpop.eup %3359 }
 0xa88   :  { %3079 = vmatmul.mubr.msk.bf16.vlgmr.msra.gmra.mxu1 %vm143_vm2, %v930_v49  ;;  %v929_v51 = vmul.f32 %v3360_v50, %v3356_v17 }
 0xa89   :  { %3092 = vmatprep.mubr.msk.bf16.mxu1 %vm3444_vm1, %v3443_v15  ;;  %3089 = vmatpush3.bf16.msra.mxu1 %v3305_v52 }
 0xa8a   :  { %v931_v38 = vpack.c.bf16 %v929_v51, %v929_v51  ;;  %3090 = vmatprep.subr.bf16.mxu1 %v3443_v15 }
 0xa8c   :  { %3085 = vmatmul.mubr.msk.bf16.vlgmr.msra.gmra.mxu0 %vm143_vm2, %v931_v38  ;;  %v2814_v38 = vld [vmem:[%s4058_s1 + $0x6] ss:$0 sm:$0xff] }
 0xa8d   :  { %3100 = vmatprep.mubr.msk.bf16.mxu0 %vm3444_vm1, %v3443_v15  ;;  %3091 = vmatpush3.bf16.msra.mxu1 %v3306_v53 }
 0xa8e   :  { %3104 = vmatprep.subr.bf16.mxu1 %v3443_v15 }
 0xb48   :  { %v974_v54 = vpop.f32.mrf.mxu1 }
 0xb4a   :  { %v3080_v55 = vpop.f32.mrf.mxu1 }
 0xb4c   :  { %v977_v56 = vpop.f32.mrf.mxu1  ;;  %v1022_v57 = vpop.f32.mrf.mxu0 }
 0xb4d   :  { %v3283_v58 = vpack.i.bf16 %v1022_v57, %v974_v54  ;;  %v3309_v56 = vld [vmem:[%s4062_s5 + $0x18] sm:$0xff]   ;;  %v3310_v57 = vld [vmem:[%s4062_s5 + $0x10] sm:$0xff]  }
 0xb4e   :  { %v3081_v59 = vpop.f32.mrf.mxu1  ;;  %v3086_v60 = vpop.f32.mrf.mxu0 }
 0xb4f   :  { %3284 = vrot.lane.b32.xlu0 %v3283_v58, %s3458_s30  ;;  %v3311_v58 = vld [vmem:[%s4062_s5 + $0x8] sm:$0xff]   ;;  %v3312_v59 = vld [vmem:[%s4062_s5] sm:$0xff]  }
 0xb50   :  { %v1025_v61 = vpop.f32.mrf.mxu0  ;;  %v2815_v60 = vld [vmem:[%s4058_s1 + $0x7] ss:$0 sm:$0xff] }
 0xb52   :  { %v3087_v62 = vpop.f32.mrf.mxu0 }
 0xbc1   :  { %v3285_v5 = vpop.permute.xlu0 %3284 }
 0xbc2   :  { %v3287_v8 = vunpack.i.h.bf16 %v3285_v5  ;;  %v3286_v9 = vunpack.i.l.bf16 %v3285_v5 }
 0xbc4   :  { %v1059_v13 = vsel %vm1057_vm5, %v1056_v11, %v3287_v8  ;;  %v1058_v14 = vsel %vm1057_vm5, %v1055_v10, %v3286_v9 }
 0xbc5   :  { %v1060_v18 = vpack.c.bf16 %v1059_v13, %v1058_v14 }
 0xbc7   :  { %3093 = vmatmul.mubr.msk.bf16.vlgmr.msra.gmra.mxu1 %vm32_vm0, %v1060_v18 }
 0xbc8   :  { %3112 = vmatprep.mubr.msk.bf16.mxu1 %vm3444_vm1, %v3443_v15  ;;  %3105 = vmatpush3.bf16.msra.mxu1 %v3309_v56 }
 0xbc9   :  { %3106 = vmatprep.subr.bf16.mxu1 %v3443_v15 }
 0xbcc   :  { %3107 = vmatpush3.bf16.msra.mxu1 %v3310_v57 }
 0xbcd   :  { %3108 = vmatprep.subr.bf16.mxu1 %v3443_v15 }
 0xbd0   :  { %3109 = vmatpush3.bf16.msra.mxu1 %v3311_v58  ;;  %v2826_v58 = vld [vmem:[%s4058_s1 + $0xa] ss:$0 sm:$0xff] }
 0xbd1   :  { %3110 = vmatprep.subr.bf16.mxu1 %v3443_v15 }
 0xbd4   :  { %3111 = vmatpush3.bf16.msra.mxu1 %v3312_v59 }
 0xbd5   :  { %3130 = vmatprep.subr.bf16.mxu1 %v3443_v15 }
 0xc87   :  { %v1119_v27 = vpop.f32.mrf.mxu1 }
 0xc88   :  { %v1120_v19 = vadd.f32 %v2809_v24, %v1119_v27 }
 0xc89   :  { %v3094_v20 = vpop.f32.mrf.mxu1 }
 0xc8a   :  { %v1126_v21 = vadd.f32 %v1120_v19, %v3530_v31 }
 0xc8b   :  { %v1122_v22 = vpop.f32.mrf.mxu1 }
 0xc8c   :  { %v1123_v23 = vadd.f32 %v2809_v24, %v1122_v22  ;;  %v1130_v25 = vsel %vm32_vm0, %v1126_v21, 0.0 }
 0xc8d   :  { %1131 = vadd.xlane.f32.xlu1 %v1130_v25  ;;  %v3095_v26 = vpop.f32.mrf.mxu1  ;;  %v2819_v25 = vld [vmem:[%s4058_s1 + $0x8] ss:$0 sm:$0xff] }
 0xc8e   :  { %v1127_v28 = vadd.f32 %v1123_v23, %v3532_v32  ;;  %v3307_v32 = vld [vmem:[%s4061_s4 + $0x8] sm:$0xff]  }
 0xc8f   :  { %3097 = vmatpush3.bf16.msra.mxu0 %v3307_v32 }
 0xc90   :  { %v1133_v29 = vsel %vm32_vm0, %v1127_v28, 0.0  ;;  %3098 = vmatprep.subr.bf16.mxu0 %v3443_v15 }
 0xc91   :  { %1134 = vadd.xlane.f32.xlu0 %v1133_v29 }
 0xc93   :  { %3099 = vmatpush3.bf16.msra.mxu0 %v3308_v12 }
 0xc94   :  { %3116 = vmatprep.subr.bf16.mxu0 %v3443_v15 }
 0xd16   :  { %v1132_v30 = vpop.xlane.xlu1 %1131 }
 0xd17   :  { %v1136_v33 = vmul.f32 0.03125, %v1132_v30 }
 0xd19   :  { %v1138_v34 = vsub.f32 %v1126_v21, %v1136_v33 }
 0xd1a   :  { %v1135_v35 = vpop.xlane.xlu0 %1134 }
 0xd1b   :  { %v1137_v36 = vmul.f32 0.03125, %v1135_v35  ;;  %v1140_v37 = vmul.f32 %v1138_v34, %v1138_v34 }
 0xd1d   :  { %v1139_v39 = vsub.f32 %v1127_v28, %v1137_v36  ;;  %v1142_v31 = vsel %vm32_vm0, %v1140_v37, 0.0 }
 0xd1e   :  { %1143 = vadd.xlane.f32.xlu0 %v1142_v31 }
 0xd1f   :  { %v1141_v40 = vmul.f32 %v1139_v39, %v1139_v39 }
 0xd21   :  { %v1145_v42 = vsel %vm32_vm0, %v1141_v40, 0.0 }
 0xd22   :  { %1146 = vadd.xlane.f32.xlu0 %v1145_v42 }
 0xda7   :  { %v1144_v16 = vpop.xlane.xlu0 %1143 }
 0xda8   :  { %v1148_v17 = vmul.f32 0.03125, %v1144_v16 }
 0xdaa   :  { %v1150_v41 = vadd.f32 1e-12, %v1148_v17 }
 0xdab   :  { %v1147_v43 = vpop.xlane.xlu0 %1146 }
 0xdac   :  { %3361 = vrsqrt.f32 %v1150_v41  ;;  %v1149_v44 = vmul.f32 0.03125, %v1147_v43 }
 0xdae   :  { %v1151_v45 = vadd.f32 1e-12, %v1149_v44 }
 0xdb0   :  { %3363 = vrsqrt.f32 %v1151_v45  ;;  %v3313_v45 = vld [vmem:[%s4059_s2 + $0x18] sm:$0xff]  }
 0xdb9   :  { %v3362_v46 = vpop.eup %3361 }
 0xdba   :  { %v1154_v47 = vmul.f32 %v3362_v46, %v1138_v34  ;;  %v3314_v46 = vld [vmem:[%s4059_s2 + $0x10] sm:$0xff]  }
 0xdbc   :  { %v1160_v51 = vmul.f32 %v2813_v48, %v1154_v47 }
 0xdbd   :  { %v3364_v49 = vpop.eup %3363 }
 0xdbe   :  { %v1155_v50 = vmul.f32 %v3364_v49, %v1139_v39  ;;  %v1166_v53 = vadd.f32 %v2814_v38, %v1160_v51 }
 0xdc0   :  { %v1161_v52 = vmul.f32 %v2813_v48, %v1155_v50 }
 0xdc2   :  { %v1167_v54 = vadd.f32 %v2814_v38, %v1161_v52 }
 0xdc4   :  { %v1168_v55 = vpack.c.bf16 %v1167_v54, %v1166_v53 }
 0xdc6   :  { %3101 = vmatmul.mubr.msk.bf16.vlgmr.msra.gmra.mxu0 %vm32_vm0, %v1168_v55 }
 0xdc7   :  { %3120 = vmatprep.mubr.msk.bf16.mxu0 %vm3444_vm1, %v3443_v15  ;;  %3117 = vmatpush3.bf16.msra.mxu0 %v3313_v45 }
 0xdc8   :  { %3118 = vmatprep.subr.bf16.mxu0 %v3443_v15 }
 0xdcb   :  { %3119 = vmatpush3.bf16.msra.mxu0 %v3314_v46 }
 0xdcc   :  { %3124 = vmatprep.subr.bf16.mxu0 %v3443_v15 }
 0xe86   :  { %v1227_v61 = vpop.f32.mrf.mxu0 }
 0xe87   :  { %v1228_v62 = vadd.f32 %v2815_v60, %v1227_v61 }
 0xe88   :  { %v3102_v63 = vpop.f32.mrf.mxu0 }
 0xe89   :  { %v1234_v0 = vmul.f32 %v1228_v62, %v1228_v62  ;;  %v2831_v63 = vld [vmem:[%s4058_s1 + $0xb] ss:$0 sm:$0xff] }
 0xe8a   :  { %v1230_v1 = vpop.f32.mrf.mxu0 }
 0xe8b   :  { %v1236_v2 = vmul.f32 %v1234_v0, %v1228_v62  ;;  %v1231_v3 = vadd.f32 %v2815_v60, %v1230_v1 }
 0xe8c   :  { %v3103_v4 = vpop.f32.mrf.mxu0 }
 0xe8d   :  { %v1238_v5 = vmul.f32 0.044715, %v1236_v2  ;;  %v1235_v6 = vmul.f32 %v1231_v3, %v1231_v3 }
 0xe8f   :  { %v1240_v7 = vadd.f32 %v1238_v5, %v1228_v62  ;;  %v1237_v8 = vmul.f32 %v1235_v6, %v1231_v3 }
 0xe91   :  { %v1242_v9 = vmul.f32 0.7978846, %v1240_v7  ;;  %v1239_v10 = vmul.f32 0.044715, %v1237_v8 }
 0xe93   :  { %3365 = vtanh.f32 %v1242_v9  ;;  %v1241_v11 = vadd.f32 %v1239_v10, %v1231_v3 }
 0xe95   :  { %v1243_v13 = vmul.f32 0.7978846, %v1241_v11 }
 0xe97   :  { %3367 = vtanh.f32 %v1243_v13 }
 0xea0   :  { %v3366_v14 = vpop.eup %3365 }
 0xea1   :  { %v1246_v18 = vadd.f32 1.0, %v3366_v14 }
 0xea3   :  { %v1248_v27 = vmul.f32 0.5, %v1246_v18 }
 0xea4   :  { %v3368_v24 = vpop.eup %3367 }
 0xea5   :  { %v1247_v19 = vadd.f32 1.0, %v3368_v24  ;;  %v1250_v21 = vmul.f32 %v1248_v27, %v1228_v62 }
 0xea7   :  { %v1249_v20 = vmul.f32 0.5, %v1247_v19 }
 0xea9   :  { %v1251_v22 = vmul.f32 %v1249_v20, %v1231_v3 }
 0xeab   :  { %v1252_v23 = vpack.c.bf16 %v1251_v22, %v1250_v21 }
 0xead   :  { %3113 = vmatmul.mubr.msk.bf16.vlgmr.msra.gmra.mxu1 %vm1290_vm6, %v1252_v23 }
 0xeae   :  { %3132 = vmatprep.mubr.msk.bf16.mxu1 %vm3444_vm1, %v3443_v15 }
 0xf6d   :  { %v1328_v26 = vpop.f32.mrf.mxu1 }
 0xf6e   :  { %v1329_v28 = vadd.f32 %v2819_v25, %v1328_v26 }
 0xf6f   :  { %v3114_v29 = vpop.f32.mrf.mxu1 }
 0xf70   :  { %v1335_v30 = vadd.f32 %v1329_v28, %v1166_v53 }
 0xf71   :  { %v1331_v33 = vpop.f32.mrf.mxu1 }
 0xf72   :  { %v1332_v34 = vadd.f32 %v2819_v25, %v1331_v33  ;;  %v1339_v35 = vsel %vm32_vm0, %v1335_v30, 0.0 }
 0xf73   :  { %1340 = vadd.xlane.f32.xlu1 %v1339_v35  ;;  %v3115_v36 = vpop.f32.mrf.mxu1 }
 0xf74   :  { %v1336_v37 = vadd.f32 %v1332_v34, %v1167_v54  ;;  %v2825_v54 = vld [vmem:[%s4058_s1 + $0x9] ss:$0 sm:$0xff] }
 0xf76   :  { %v1342_v39 = vsel %vm32_vm0, %v1336_v37, 0.0 }
 0xf77   :  { %1343 = vadd.xlane.f32.xlu0 %v1342_v39 }
 0xffc   :  { %v1341_v31 = vpop.xlane.xlu1 %1340 }
 0xffd   :  { %v1345_v40 = vmul.f32 0.03125, %v1341_v31 }
 0xfff   :  { %v1347_v42 = vsub.f32 %v1335_v30, %v1345_v40 }
0x1000   :  { %v1344_v32 = vpop.xlane.xlu0 %1343 }
0x1001   :  { %v1346_v12 = vmul.f32 0.03125, %v1344_v32  ;;  %v1349_v16 = vmul.f32 %v1347_v42, %v1347_v42 }
0x1003   :  { %v1348_v17 = vsub.f32 %v1336_v37, %v1346_v12  ;;  %v1351_v41 = vsel %vm32_vm0, %v1349_v16, 0.0 }
0x1004   :  { %1352 = vadd.xlane.f32.xlu1 %v1351_v41 }
0x1005   :  { %v1350_v43 = vmul.f32 %v1348_v17, %v1348_v17 }
0x1007   :  { %v1354_v44 = vsel %vm32_vm0, %v1350_v43, 0.0 }
0x1008   :  { %1355 = vadd.xlane.f32.xlu0 %v1354_v44 }
0x108d   :  { %v1353_v47 = vpop.xlane.xlu1 %1352 }
0x108e   :  { %v1357_v48 = vmul.f32 0.03125, %v1353_v47 }
0x1090   :  { %v1359_v49 = vadd.f32 1e-12, %v1357_v48 }
0x1091   :  { %v1356_v50 = vpop.xlane.xlu0 %1355 }
0x1092   :  { %3369 = vrsqrt.f32 %v1359_v49  ;;  %v1358_v51 = vmul.f32 0.03125, %v1356_v50 }
0x1094   :  { %v1360_v38 = vadd.f32 1e-12, %v1358_v51 }
0x1096   :  { %3371 = vrsqrt.f32 %v1360_v38 }
0x109f   :  { %v3370_v52 = vpop.eup %3369 }
0x10a0   :  { %v1363_v53 = vmul.f32 %v3370_v52, %v1347_v42 }
0x10a2   :  { %v1369_v57 = vmul.f32 %v2825_v54, %v1363_v53 }
0x10a3   :  { %v3372_v55 = vpop.eup %3371 }
0x10a4   :  { %v1364_v56 = vmul.f32 %v3372_v55, %v1348_v17  ;;  %v3792_v60 = vadd.f32 %v2826_v58, %v1369_v57 }
0x10a6   :  { %v1370_v59 = vmul.f32 %v2825_v54, %v1364_v56 }
0x10a8   :  { %v3794_v61 = vadd.f32 %v2826_v58, %v1370_v59 }
0x10aa   :  { %v1377_v62 = vpack.c.bf16 %v3794_v61, %v3792_v60 }
0x10ac   :  { %3121 = vmatmul.mubr.msk.bf16.vlgmr.msra.gmra.mxu0 %vm32_vm0, %v1377_v62 }
0x10ad   :  { %3126 = vmatprep.mubr.msk.bf16.mxu0 %vm3444_vm1, %v3443_v15 }
0x116c   :  { %v1437_v0 = vpop.f32.mrf.mxu0 }
0x116d   :  { %v1438_v1 = vadd.f32 %v2831_v63, %v1437_v0 }
0x116e   :  { %v3122_v2 = vpop.f32.mrf.mxu0 }
0x116f   :  { %v3804_v3 = vpack.c.bf16 %v1438_v1, %v1438_v1 }
0x1170   :  { %v1440_v4 = vpop.f32.mrf.mxu0 }
0x1171   :  { %v1441_v5 = vadd.f32 %v2831_v63, %v1440_v4  ;;  %1447 = vrot.lane.b32.xlu1 %v3804_v3, %s3445_s14 }
0x1172   :  { %v3123_v6 = vpop.f32.mrf.mxu0 }
0x1173   :  { %v3808_v7 = vpack.c.bf16 %v1441_v5, %v1441_v5 }
0x1175   :  { %1496 = vrot.lane.b32.xlu0 %v3808_v7, %s3445_s14 }
0x11e3   :  { %v1448_v8 = vpop.permute.xlu1 %1447 }
0x11e4   :  { %v1453_v9 = vsel %vm143_vm2, %v1448_v8, 0 }
0x11e5   :  { %3125 = vmatpush3.bf16.xpose.msra.mxu0 %v1453_v9 }
0x11e6   :  { %3136 = vmatprep.subr.bf16.mxu0 %v3443_v15 }
0x11e7   :  { %v1497_v10 = vpop.permute.xlu0 %1496 }
0x11e8   :  { %v1502_v11 = vsel %vm143_vm2, %v1497_v10, 0 }
0x11e9   :  { %3131 = vmatpush3.bf16.xpose.msra.mxu1 %v1502_v11 }
0x11ea   :  { %3142 = vmatprep.subr.bf16.mxu1 %v3443_v15 }
0x11ec   :  { %3127 = vmatmul.mubr.msk.bf16.vlgmr.msra.gmra.mxu0 %vm143_vm2, %v3804_v3 }
0x11ed   :  { %3138 = vmatprep.mubr.msk.bf16.mxu0 %vm3444_vm1, %v3443_v15 }
0x11f0   :  { %3133 = vmatmul.mubr.msk.bf16.vlgmr.msra.gmra.mxu1 %vm143_vm2, %v3808_v7 }
0x11f1   :  { %3144 = vmatprep.mubr.msk.bf16.mxu1 %vm3444_vm1, %v3443_v15 }
0x12ac   :  { %v1489_v13 = vpop.f32.mrf.mxu0 }
0x12ad   :  { %v1544_v14 = vmul.f32 0.35355338, %v1489_v13 }
0x12ae   :  { %v3128_v18 = vpop.f32.mrf.mxu0 }
0x12af   :  { %v1546_v24 = vsel %vm143_vm2, %v1544_v14, -inf }
0x12b0   :  { %v1538_v27 = vpop.f32.mrf.mxu1  ;;  %1547 = vmax.xlane.f32.xlu1 %v1546_v24  ;;  %v1492_v19 = vpop.f32.mrf.mxu0 }
0x12b1   :  { %v1545_v20 = vmul.f32 0.35355338, %v1538_v27 }
0x12b2   :  { %v3129_v21 = vpop.f32.mrf.mxu0  ;;  %v3134_v22 = vpop.f32.mrf.mxu1 }
0x12b3   :  { %v1549_v23 = vsel %vm143_vm2, %v1545_v20, -inf }
0x12b4   :  { %1550 = vmax.xlane.f32.xlu0 %v1549_v23  ;;  %v1541_v25 = vpop.f32.mrf.mxu1 }
0x12b6   :  { %v3135_v26 = vpop.f32.mrf.mxu1 }
0x12c1   :  { %1570 = vrot.lane.b32.xlu1 %v3804_v3, %s3446_s15 }
0x1339   :  { %v1548_v28 = vpop.xlane.xlu1 %1547 }
0x133a   :  { %v1552_v29 = vsub.f32 %v1544_v14, %v1548_v28 }
0x133c   :  { %v1554_v30 = vmul.f32 1.442695, %v1552_v29 }
0x133d   :  { %v1551_v33 = vpop.xlane.xlu0 %1550  ;;  %v1571_v34 = vpop.permute.xlu1 %1570 }
0x133e   :  { %3373 = vpow2.f32 %v1554_v30  ;;  %v1553_v35 = vsub.f32 %v1545_v20, %v1551_v33  ;;  %v1576_v36 = vsel %vm270_vm3, %v1571_v34, 0 }
0x133f   :  { %3137 = vmatpush3.bf16.msra.mxu0 %v1576_v36 }
0x1340   :  { %v1556_v37 = vmul.f32 1.442695, %v1553_v35  ;;  %3148 = vmatprep.subr.bf16.mxu0 %v3443_v15 }
0x1342   :  { %3375 = vpow2.f32 %v1556_v37 }
0x134b   :  { %v3374_v39 = vpop.eup %3373 }
0x134c   :  { %v1558_v31 = vsel %vm143_vm2, %v3374_v39, 0.0 }
0x134d   :  { %1559 = vadd.xlane.f32.xlu1 %v1558_v31 }
0x134f   :  { %v3376_v40 = vpop.eup %3375 }
0x1350   :  { %v1561_v42 = vsel %vm143_vm2, %v3376_v40, 0.0 }
0x1351   :  { %1562 = vadd.xlane.f32.xlu0 %v1561_v42 }
0x135e   :  { %1668 = vrot.lane.b32.xlu1 %v3804_v3, %s3447_s16 }
0x1362   :  { %1718 = vrot.lane.b32.xlu1 %v3808_v7, %s3447_s16 }
0x1366   :  { %1666 = vrot.lane.b32.xlu1 %v3804_v3, %s3448_s17 }
0x1367   :  { %1618 = vrot.lane.b32.xlu0 %v3808_v7, %s3446_s15 }
0x136b   :  { %1716 = vrot.lane.b32.xlu0 %v3808_v7, %s3448_s17 }
0x13d6   :  { %v1560_v32 = vpop.xlane.xlu1 %1559 }
0x13d7   :  { %3377 = vrcp.f32 %v1560_v32 }
0x13da   :  { %v1563_v12 = vpop.xlane.xlu0 %1562  ;;  %v1669_v43 = vpop.permute.xlu1 %1668 }
0x13db   :  { %3379 = vrcp.f32 %v1563_v12  ;;  %v1674_v47 = vsel %vm143_vm2, %v1669_v43, 0 }
0x13de   :  { %v1619_v16 = vpop.permute.xlu0 %1618  ;;  %v1719_v49 = vpop.permute.xlu1 %1718 }
0x13df   :  { %v1624_v17 = vsel %vm270_vm3, %v1619_v16, 0  ;;  %v1724_v51 = vsel %vm143_vm2, %v1719_v49, 0 }
0x13e0   :  { %3143 = vmatpush3.bf16.msra.mxu1 %v1624_v17 }
0x13e1   :  { %3154 = vmatprep.subr.bf16.mxu1 %v3443_v15 }
0x13e2   :  { %v1667_v38 = vpop.permute.xlu1 %1666  ;;  %v1717_v52 = vpop.permute.xlu0 %1716 }
0x13e4   :  { %v3378_v41 = vpop.eup %3377 }
0x13e5   :  { %v1566_v44 = vmul.f32 %v3378_v41, %v3374_v39 }
0x13e7   :  { %v1568_v45 = vpack.c.bf16 %v1566_v44, %v1566_v44 }
0x13e8   :  { %v3380_v46 = vpop.eup %3379 }
0x13e9   :  { %3139 = vmatmul.mubr.msk.bf16.vlgmr.msra.gmra.mxu0 %vm143_vm2, %v1568_v45  ;;  %v1567_v48 = vmul.f32 %v3380_v46, %v3376_v40 }
0x13ea   :  { %3149 = vmatpush3.bf16.xpose.msra.mxu0 %v1674_v47  ;;  %3150 = vmatprep.mubr.msk.bf16.mxu0 %vm3444_vm1, %v3443_v15 }
0x13eb   :  { %v1569_v50 = vpack.c.bf16 %v1567_v48, %v1567_v48  ;;  %3160 = vmatprep.subr.bf16.mxu0 %v3443_v15 }
0x13ed   :  { %3145 = vmatmul.mubr.msk.bf16.vlgmr.msra.gmra.mxu1 %vm143_vm2, %v1569_v50 }
0x13ee   :  { %3155 = vmatpush3.bf16.xpose.msra.mxu1 %v1724_v51  ;;  %3156 = vmatprep.mubr.msk.bf16.mxu1 %vm3444_vm1, %v3443_v15 }
0x13ef   :  { %3166 = vmatprep.subr.bf16.mxu1 %v3443_v15 }
0x13f1   :  { %3151 = vmatmul.mubr.msk.bf16.vlgmr.msra.gmra.mxu0 %vm143_vm2, %v1667_v38 }
0x13f2   :  { %3162 = vmatprep.mubr.msk.bf16.mxu0 %vm3444_vm1, %v3443_v15 }
0x13f5   :  { %3157 = vmatmul.mubr.msk.bf16.vlgmr.msra.gmra.mxu1 %vm143_vm2, %v1717_v52 }
0x13f6   :  { %3168 = vmatprep.mubr.msk.bf16.mxu1 %vm3444_vm1, %v3443_v15 }
0x14a9   :  { %v3860_v53 = vpop.f32.mrf.mxu0 }
0x14ab   :  { %v3140_v54 = vpop.f32.mrf.mxu0 }
0x14ad   :  { %v1615_v55 = vpop.f32.mrf.mxu0  ;;  %v3862_v56 = vpop.f32.mrf.mxu1 }
0x14af   :  { %v3141_v57 = vpop.f32.mrf.mxu0  ;;  %v3146_v58 = vpop.f32.mrf.mxu1 }
0x14b1   :  { %v1663_v59 = vpop.f32.mrf.mxu1  ;;  %v1710_v62 = vpop.f32.mrf.mxu0 }
0x14b2   :  { %v1766_v63 = vmul.f32 0.35355338, %v1710_v62 }
0x14b3   :  { %v3147_v0 = vpop.f32.mrf.mxu1  ;;  %v3152_v1 = vpop.f32.mrf.mxu0 }
0x14b4   :  { %v1768_v2 = vsel %vm143_vm2, %v1766_v63, -inf }
0x14b5   :  { %v1760_v4 = vpop.f32.mrf.mxu1  ;;  %1769 = vmax.xlane.f32.xlu1 %v1768_v2  ;;  %v1713_v5 = vpop.f32.mrf.mxu0 }
0x14b6   :  { %v1767_v6 = vmul.f32 0.35355338, %v1760_v4 }
0x14b7   :  { %v3153_v8 = vpop.f32.mrf.mxu0  ;;  %v3158_v9 = vpop.f32.mrf.mxu1 }
0x14b8   :  { %v1771_v10 = vsel %vm143_vm2, %v1767_v6, -inf }
0x14b9   :  { %1772 = vmax.xlane.f32.xlu0 %v1771_v10  ;;  %v1763_v11 = vpop.f32.mrf.mxu1 }
0x14bb   :  { %v3159_v13 = vpop.f32.mrf.mxu1 }
0x14c6   :  { %1792 = vrot.lane.b32.xlu1 %v3804_v3, %s3449_s18 }
0x14ca   :  { %1890 = vrot.lane.b32.xlu1 %v3804_v3, %s3450_s19 }
0x14ce   :  { %1940 = vrot.lane.b32.xlu1 %v3808_v7, %s3450_s19 }
0x14d2   :  { %1888 = vrot.lane.b32.xlu1 %v3804_v3, %s3451_s20 }
0x153e   :  { %v1770_v14 = vpop.xlane.xlu1 %1769 }
0x153f   :  { %v1774_v18 = vsub.f32 %v1766_v63, %v1770_v14 }
0x1541   :  { %v1776_v24 = vmul.f32 1.442695, %v1774_v18 }
0x1542   :  { %v1773_v27 = vpop.xlane.xlu0 %1772  ;;  %v1793_v19 = vpop.permute.xlu1 %1792 }
0x1543   :  { %3381 = vpow2.f32 %v1776_v24  ;;  %v1775_v20 = vsub.f32 %v1767_v6, %v1773_v27  ;;  %v1798_v21 = vsel %vm270_vm3, %v1793_v19, 0 }
0x1544   :  { %3161 = vmatpush3.bf16.msra.mxu0 %v1798_v21 }
0x1545   :  { %v1778_v22 = vmul.f32 1.442695, %v1775_v20  ;;  %3172 = vmatprep.subr.bf16.mxu0 %v3443_v15 }
0x1546   :  { %v1891_v36 = vpop.permute.xlu1 %1890 }
0x1547   :  { %3383 = vpow2.f32 %v1778_v22  ;;  %v1896_v40 = vsel %vm143_vm2, %v1891_v36, 0 }
0x154a   :  { %v1941_v32 = vpop.permute.xlu1 %1940 }
0x154b   :  { %v1946_v16 = vsel %vm143_vm2, %v1941_v32, 0 }
0x154e   :  { %v1889_v17 = vpop.permute.xlu1 %1888 }
0x1550   :  { %v3382_v23 = vpop.eup %3381 }
0x1551   :  { %v1780_v25 = vsel %vm143_vm2, %v3382_v23, 0.0 }
0x1552   :  { %1781 = vadd.xlane.f32.xlu0 %v1780_v25 }
0x1554   :  { %v3384_v26 = vpop.eup %3383 }
0x1555   :  { %v1783_v28 = vsel %vm143_vm2, %v3384_v26, 0.0 }
0x1556   :  { %1784 = vadd.xlane.f32.xlu0 %v1783_v28 }
0x156c   :  { %1840 = vrot.lane.b32.xlu0 %v3808_v7, %s3449_s18 }
0x1570   :  { %1938 = vrot.lane.b32.xlu0 %v3808_v7, %s3451_s20 }
0x15db   :  { %v1782_v29 = vpop.xlane.xlu0 %1781 }
0x15dc   :  { %3385 = vrcp.f32 %v1782_v29 }
0x15df   :  { %v1785_v30 = vpop.xlane.xlu0 %1784 }
0x15e0   :  { %3387 = vrcp.f32 %v1785_v30 }
0x15e3   :  { %v1841_v33 = vpop.permute.xlu0 %1840 }
0x15e4   :  { %v1846_v34 = vsel %vm270_vm3, %v1841_v33, 0 }
0x15e5   :  { %3167 = vmatpush3.bf16.msra.mxu1 %v1846_v34 }
0x15e6   :  { %3178 = vmatprep.subr.bf16.mxu1 %v3443_v15 }
0x15e7   :  { %v1939_v41 = vpop.permute.xlu0 %1938 }
0x15e9   :  { %v3386_v35 = vpop.eup %3385 }
0x15ea   :  { %v1788_v37 = vmul.f32 %v3386_v35, %v3382_v23 }
0x15ec   :  { %v1790_v39 = vpack.c.bf16 %v1788_v37, %v1788_v37 }
0x15ed   :  { %v3388_v31 = vpop.eup %3387 }
0x15ee   :  { %3163 = vmatmul.mubr.msk.bf16.vlgmr.msra.gmra.mxu0 %vm143_vm2, %v1790_v39  ;;  %v1789_v42 = vmul.f32 %v3388_v31, %v3384_v26 }
0x15ef   :  { %3173 = vmatpush3.bf16.xpose.msra.mxu0 %v1896_v40  ;;  %3174 = vmatprep.mubr.msk.bf16.mxu0 %vm3444_vm1, %v3443_v15 }
0x15f0   :  { %v1791_v12 = vpack.c.bf16 %v1789_v42, %v1789_v42  ;;  %3184 = vmatprep.subr.bf16.mxu0 %v3443_v15 }
0x15f2   :  { %3169 = vmatmul.mubr.msk.bf16.vlgmr.msra.gmra.mxu1 %vm143_vm2, %v1791_v12 }
0x15f3   :  { %3179 = vmatpush3.bf16.xpose.msra.mxu1 %v1946_v16  ;;  %3180 = vmatprep.mubr.msk.bf16.mxu1 %vm3444_vm1, %v3443_v15 }
0x15f4   :  { %3190 = vmatprep.subr.bf16.mxu1 %v3443_v15 }
0x15f6   :  { %3175 = vmatmul.mubr.msk.bf16.vlgmr.msra.gmra.mxu0 %vm143_vm2, %v1889_v17 }
0x15f7   :  { %3186 = vmatprep.mubr.msk.bf16.mxu0 %vm3444_vm1, %v3443_v15 }
0x15fa   :  { %3181 = vmatmul.mubr.msk.bf16.vlgmr.msra.gmra.mxu1 %vm143_vm2, %v1939_v41 }
0x15fb   :  { %3192 = vmatprep.mubr.msk.bf16.mxu1 %vm3444_vm1, %v3443_v15 }
0x16ae   :  { %v3900_v43 = vpop.f32.mrf.mxu0 }
0x16b0   :  { %v3164_v44 = vpop.f32.mrf.mxu0 }
0x16b2   :  { %v1837_v45 = vpop.f32.mrf.mxu0  ;;  %v3902_v46 = vpop.f32.mrf.mxu1 }
0x16b3   :  { %v3288_v47 = vpack.i.bf16 %v3902_v46, %v3900_v43 }
0x16b4   :  { %v3165_v48 = vpop.f32.mrf.mxu0  ;;  %v3170_v49 = vpop.f32.mrf.mxu1 }
0x16b6   :  { %v1885_v50 = vpop.f32.mrf.mxu1  ;;  %v1932_v51 = vpop.f32.mrf.mxu0 }
0x16b7   :  { %v1988_v38 = vmul.f32 0.35355338, %v1932_v51 }
0x16b8   :  { %v3171_v52 = vpop.f32.mrf.mxu1  ;;  %v3176_v54 = vpop.f32.mrf.mxu0 }
0x16b9   :  { %v1990_v55 = vsel %vm143_vm2, %v1988_v38, -inf }
0x16ba   :  { %v1982_v57 = vpop.f32.mrf.mxu1  ;;  %1991 = vmax.xlane.f32.xlu1 %v1990_v55  ;;  %v1935_v58 = vpop.f32.mrf.mxu0 }
0x16bb   :  { %v1989_v59 = vmul.f32 0.35355338, %v1982_v57 }
0x16bc   :  { %v3177_v62 = vpop.f32.mrf.mxu0  ;;  %v3182_v63 = vpop.f32.mrf.mxu1 }
0x16bd   :  { %v1993_v0 = vsel %vm143_vm2, %v1989_v59, -inf }
0x16be   :  { %1994 = vmax.xlane.f32.xlu0 %v1993_v0  ;;  %v1985_v1 = vpop.f32.mrf.mxu1 }
0x16c0   :  { %v3183_v2 = vpop.f32.mrf.mxu1 }
0x16cb   :  { %2014 = vrot.lane.b32.xlu1 %v3804_v3, %s3452_s21 }
0x16cf   :  { %2112 = vrot.lane.b32.xlu1 %v3804_v3, %s3453_s22 }
0x16d3   :  { %2162 = vrot.lane.b32.xlu1 %v3808_v7, %s3453_s22 }
0x16d7   :  { %2110 = vrot.lane.b32.xlu1 %v3804_v3, %s3454_s23 }
0x1743   :  { %v1992_v4 = vpop.xlane.xlu1 %1991 }
0x1744   :  { %v1996_v5 = vsub.f32 %v1988_v38, %v1992_v4 }
0x1746   :  { %v1998_v6 = vmul.f32 1.442695, %v1996_v5 }
0x1747   :  { %v1995_v8 = vpop.xlane.xlu0 %1994  ;;  %v2015_v9 = vpop.permute.xlu1 %2014 }
0x1748   :  { %3389 = vpow2.f32 %v1998_v6  ;;  %v1997_v10 = vsub.f32 %v1989_v59, %v1995_v8  ;;  %v2020_v11 = vsel %vm270_vm3, %v2015_v9, 0 }
0x1749   :  { %3185 = vmatpush3.bf16.msra.mxu0 %v2020_v11 }
0x174a   :  { %v2000_v13 = vmul.f32 1.442695, %v1997_v10  ;;  %3196 = vmatprep.subr.bf16.mxu0 %v3443_v15 }
0x174b   :  { %v2113_v25 = vpop.permute.xlu1 %2112 }
0x174c   :  { %3391 = vpow2.f32 %v2000_v13  ;;  %v2118_v30 = vsel %vm143_vm2, %v2113_v25, 0 }
0x174f   :  { %v2163_v34 = vpop.permute.xlu1 %2162 }
0x1750   :  { %v2168_v36 = vsel %vm143_vm2, %v2163_v34, 0 }
0x1753   :  { %v2111_v37 = vpop.permute.xlu1 %2110 }
0x1755   :  { %v3390_v14 = vpop.eup %3389 }
0x1756   :  { %v2002_v18 = vsel %vm143_vm2, %v3390_v14, 0.0 }
0x1757   :  { %2003 = vadd.xlane.f32.xlu0 %v2002_v18 }
0x1759   :  { %v3392_v24 = vpop.eup %3391 }
0x175a   :  { %v2005_v27 = vsel %vm143_vm2, %v3392_v24, 0.0 }
0x175b   :  { %2006 = vadd.xlane.f32.xlu0 %v2005_v27 }
0x1771   :  { %2062 = vrot.lane.b32.xlu0 %v3808_v7, %s3452_s21 }
0x1775   :  { %2160 = vrot.lane.b32.xlu0 %v3808_v7, %s3454_s23 }
0x17e0   :  { %v2004_v19 = vpop.xlane.xlu0 %2003 }
0x17e1   :  { %3393 = vrcp.f32 %v2004_v19  ;;  %v3315_v19 = vld [vmem:[%s4060_s3 + $0x18] sm:$0xff]  }
0x17e4   :  { %v2007_v20 = vpop.xlane.xlu0 %2006 }
0x17e5   :  { %3395 = vrcp.f32 %v2007_v20  ;;  %v3316_v20 = vld [vmem:[%s4060_s3 + $0x10] sm:$0xff]  }
0x17e8   :  { %v2063_v21 = vpop.permute.xlu0 %2062 }
0x17e9   :  { %v2068_v22 = vsel %vm270_vm3, %v2063_v21, 0 }
0x17ea   :  { %3191 = vmatpush3.bf16.msra.mxu1 %v2068_v22 }
0x17eb   :  { %3202 = vmatprep.subr.bf16.mxu1 %v3443_v15 }
0x17ec   :  { %v2161_v39 = vpop.permute.xlu0 %2160 }
0x17ee   :  { %v3394_v23 = vpop.eup %3393 }
0x17ef   :  { %v2010_v26 = vmul.f32 %v3394_v23, %v3390_v14 }
0x17f1   :  { %v2012_v28 = vpack.c.bf16 %v2010_v26, %v2010_v26 }
0x17f2   :  { %v3396_v29 = vpop.eup %3395 }
0x17f3   :  { %3187 = vmatmul.mubr.msk.bf16.vlgmr.msra.gmra.mxu0 %vm143_vm2, %v2012_v28  ;;  %v2011_v33 = vmul.f32 %v3396_v29, %v3392_v24 }
0x17f4   :  { %3197 = vmatpush3.bf16.xpose.msra.mxu0 %v2118_v30  ;;  %3198 = vmatprep.mubr.msk.bf16.mxu0 %vm3444_vm1, %v3443_v15 }
0x17f5   :  { %v2013_v35 = vpack.c.bf16 %v2011_v33, %v2011_v33  ;;  %3208 = vmatprep.subr.bf16.mxu0 %v3443_v15 }
0x17f7   :  { %3193 = vmatmul.mubr.msk.bf16.vlgmr.msra.gmra.mxu1 %vm143_vm2, %v2013_v35 }
0x17f8   :  { %3203 = vmatpush3.bf16.xpose.msra.mxu1 %v2168_v36  ;;  %3204 = vmatprep.mubr.msk.bf16.mxu1 %vm3444_vm1, %v3443_v15 }
0x17f9   :  { %3214 = vmatprep.subr.bf16.mxu1 %v3443_v15 }
0x17fb   :  { %3199 = vmatmul.mubr.msk.bf16.vlgmr.msra.gmra.mxu0 %vm143_vm2, %v2111_v37 }
0x17fc   :  { %3210 = vmatprep.mubr.msk.bf16.mxu0 %vm3444_vm1, %v3443_v15 }
0x17ff   :  { %3205 = vmatmul.mubr.msk.bf16.vlgmr.msra.gmra.mxu1 %vm143_vm2, %v2161_v39 }
0x1800   :  { %3216 = vmatprep.mubr.msk.bf16.mxu1 %vm3444_vm1, %v3443_v15 }
0x18b3   :  { %v2056_v31 = vpop.f32.mrf.mxu0 }
0x18b5   :  { %v3188_v40 = vpop.f32.mrf.mxu0 }
0x18b7   :  { %v2059_v42 = vpop.f32.mrf.mxu0  ;;  %v2104_v32 = vpop.f32.mrf.mxu1 }
0x18b8   :  { %v3293_v59 = vpack.i.bf16 %v2104_v32, %v2056_v31 }
0x18b9   :  { %v3189_v12 = vpop.f32.mrf.mxu0  ;;  %v3194_v16 = vpop.f32.mrf.mxu1 }
0x18bb   :  { %v2107_v17 = vpop.f32.mrf.mxu1  ;;  %v2154_v41 = vpop.f32.mrf.mxu0 }
0x18bc   :  { %v2210_v44 = vmul.f32 0.35355338, %v2154_v41 }
0x18bd   :  { %v3195_v45 = vpop.f32.mrf.mxu1  ;;  %v3200_v48 = vpop.f32.mrf.mxu0 }
0x18be   :  { %v2212_v49 = vsel %vm143_vm2, %v2210_v44, -inf }
0x18bf   :  { %v2204_v50 = vpop.f32.mrf.mxu1  ;;  %2213 = vmax.xlane.f32.xlu1 %v2212_v49  ;;  %v2157_v51 = vpop.f32.mrf.mxu0 }
0x18c0   :  { %v2211_v38 = vmul.f32 0.35355338, %v2204_v50 }
0x18c1   :  { %v3201_v52 = vpop.f32.mrf.mxu0  ;;  %v3206_v54 = vpop.f32.mrf.mxu1 }
0x18c2   :  { %v2215_v55 = vsel %vm143_vm2, %v2211_v38, -inf }
0x18c3   :  { %2216 = vmax.xlane.f32.xlu0 %v2215_v55  ;;  %v2207_v57 = vpop.f32.mrf.mxu1 }
0x18c5   :  { %v3207_v58 = vpop.f32.mrf.mxu1 }
0x18d0   :  { %2236 = vrot.lane.b32.xlu1 %v3804_v3, %s3455_s24 }
0x18d4   :  { %3289 = vrot.lane.b32.xlu1 %v3288_v47, %s3456_s25 }
0x18d8   :  { %3294 = vrot.lane.b32.xlu1 %v3293_v59, %s3457_s26 }
0x1948   :  { %v2214_v62 = vpop.xlane.xlu1 %2213 }
0x1949   :  { %v2218_v63 = vsub.f32 %v2210_v44, %v2214_v62 }
0x194b   :  { %v2220_v0 = vmul.f32 1.442695, %v2218_v63 }
0x194c   :  { %v2217_v1 = vpop.xlane.xlu0 %2216  ;;  %v2237_v2 = vpop.permute.xlu1 %2236 }
0x194d   :  { %3397 = vpow2.f32 %v2220_v0  ;;  %v2219_v4 = vsub.f32 %v2211_v38, %v2217_v1  ;;  %v2242_v5 = vsel %vm270_vm3, %v2237_v2, 0 }
0x194e   :  { %3209 = vmatpush3.bf16.msra.mxu0 %v2242_v5 }
0x194f   :  { %v2222_v6 = vmul.f32 1.442695, %v2219_v4  ;;  %3220 = vmatprep.subr.bf16.mxu0 %v3443_v15 }
0x1950   :  { %v3290_v34 = vpop.permute.xlu1 %3289 }
0x1951   :  { %3399 = vpow2.f32 %v2222_v6  ;;  %v3292_v36 = vunpack.i.h.bf16 %v3290_v34  ;;  %v3291_v37 = vunpack.i.l.bf16 %v3290_v34 }
0x1953   :  { %v2357_v42 = vsel %vm143_vm2, %v3862_v56, %v3292_v36  ;;  %v2356_v32 = vsel %vm143_vm2, %v3860_v53, %v3291_v37  ;;  %v2855_v53 = vld [vmem:[%s4058_s1 + $0xc] ss:$0 sm:$0xff] }
0x1954   :  { %v3295_v35 = vpop.permute.xlu1 %3294 }
0x1955   :  { %v3297_v39 = vunpack.i.h.bf16 %v3295_v35  ;;  %v3296_v31 = vunpack.i.l.bf16 %v3295_v35 }
0x1957   :  { %v2358_v17 = vsel %vm1054_vm4, %v2356_v32, %v3296_v31  ;;  %v2359_v41 = vsel %vm1054_vm4, %v2357_v42, %v3297_v39 }
0x195a   :  { %v3398_v3 = vpop.eup %3397 }
0x195b   :  { %v2224_v43 = vsel %vm143_vm2, %v3398_v3, 0.0 }
0x195c   :  { %2225 = vadd.xlane.f32.xlu0 %v2224_v43 }
0x195e   :  { %v3400_v46 = vpop.eup %3399 }
0x195f   :  { %v2227_v47 = vsel %vm143_vm2, %v3400_v46, 0.0 }
0x1960   :  { %2228 = vadd.xlane.f32.xlu0 %v2227_v47 }
0x1976   :  { %2284 = vrot.lane.b32.xlu0 %v3808_v7, %s3455_s24 }
0x19e5   :  { %v2226_v8 = vpop.xlane.xlu0 %2225 }
0x19e6   :  { %3401 = vrcp.f32 %v2226_v8 }
0x19e9   :  { %v2229_v9 = vpop.xlane.xlu0 %2228 }
0x19ea   :  { %3403 = vrcp.f32 %v2229_v9 }
0x19ed   :  { %v2285_v10 = vpop.permute.xlu0 %2284 }
0x19ee   :  { %v2290_v11 = vsel %vm270_vm3, %v2285_v10, 0 }
0x19ef   :  { %3215 = vmatpush3.bf16.msra.mxu1 %v2290_v11 }
0x19f0   :  { %3228 = vmatprep.subr.bf16.mxu1 %v3443_v15 }
0x19f3   :  { %v3402_v13 = vpop.eup %3401 }
0x19f4   :  { %v2232_v14 = vmul.f32 %v3402_v13, %v3398_v3  ;;  %v3318_v3 = vld [vmem:[%s4061_s4 + $0x10] sm:$0xff]  }
0x19f6   :  { %v2234_v18 = vpack.c.bf16 %v2232_v14, %v2232_v14  ;;  %v2859_v14 = vld [vmem:[%s4058_s1 + $0xd] ss:$0 sm:$0xff] }
0x19f7   :  { %v3404_v24 = vpop.eup %3403 }
0x19f8   :  { %3211 = vmatmul.mubr.msk.bf16.vlgmr.msra.gmra.mxu0 %vm143_vm2, %v2234_v18  ;;  %v2233_v27 = vmul.f32 %v3404_v24, %v3400_v46 }
0x19f9   :  { %3224 = vmatprep.mubr.msk.bf16.mxu0 %vm3444_vm1, %v3443_v15  ;;  %3221 = vmatpush3.bf16.msra.mxu0 %v3315_v19 }
0x19fa   :  { %v2235_v7 = vpack.c.bf16 %v2233_v27, %v2233_v27  ;;  %3222 = vmatprep.subr.bf16.mxu0 %v3443_v15 }
0x19fc   :  { %3217 = vmatmul.mubr.msk.bf16.vlgmr.msra.gmra.mxu1 %vm143_vm2, %v2235_v7  ;;  %v2860_v7 = vld [vmem:[%s4058_s1 + $0xe] ss:$0 sm:$0xff] }
0x19fd   :  { %3232 = vmatprep.mubr.msk.bf16.mxu1 %vm3444_vm1, %v3443_v15  ;;  %3223 = vmatpush3.bf16.msra.mxu0 %v3316_v20 }
0x19fe   :  { %3236 = vmatprep.subr.bf16.mxu0 %v3443_v15 }
0x1ab8   :  { %v2278_v21 = vpop.f32.mrf.mxu0 }
0x1aba   :  { %v3212_v22 = vpop.f32.mrf.mxu0 }
0x1abc   :  { %v2281_v23 = vpop.f32.mrf.mxu0  ;;  %v2326_v25 = vpop.f32.mrf.mxu1 }
0x1abd   :  { %v3298_v26 = vpack.i.bf16 %v2326_v25, %v2278_v21  ;;  %v3319_v23 = vld [vmem:[%s4062_s5 + $0x38] sm:$0xff]   ;;  %v3320_v25 = vld [vmem:[%s4062_s5 + $0x30] sm:$0xff]  }
0x1abe   :  { %v3213_v28 = vpop.f32.mrf.mxu0  ;;  %v3218_v29 = vpop.f32.mrf.mxu1 }
0x1abf   :  { %3299 = vrot.lane.b32.xlu1 %v3298_v26, %s3458_s30  ;;  %v3321_v26 = vld [vmem:[%s4062_s5 + $0x28] sm:$0xff]   ;;  %v3322_v28 = vld [vmem:[%s4062_s5 + $0x20] sm:$0xff]  }
0x1ac0   :  { %v2329_v30 = vpop.f32.mrf.mxu1  ;;  %v2865_v29 = vld [vmem:[%s4058_s1 + $0xf] ss:$0 sm:$0xff] }
0x1ac2   :  { %v3219_v33 = vpop.f32.mrf.mxu1 }
0x1b31   :  { %v3300_v40 = vpop.permute.xlu1 %3299 }
0x1b32   :  { %v3302_v12 = vunpack.i.h.bf16 %v3300_v40  ;;  %v3301_v16 = vunpack.i.l.bf16 %v3300_v40 }
0x1b34   :  { %v2361_v44 = vsel %vm1057_vm5, %v2359_v41, %v3302_v12  ;;  %v2360_v45 = vsel %vm1057_vm5, %v2358_v17, %v3301_v16 }
0x1b35   :  { %v2362_v48 = vpack.c.bf16 %v2361_v44, %v2360_v45 }
0x1b37   :  { %3225 = vmatmul.mubr.msk.bf16.vlgmr.msra.gmra.mxu0 %vm32_vm0, %v2362_v48 }
0x1b38   :  { %3244 = vmatprep.mubr.msk.bf16.mxu0 %vm3444_vm1, %v3443_v15  ;;  %3237 = vmatpush3.bf16.msra.mxu0 %v3319_v23 }
0x1b39   :  { %3238 = vmatprep.subr.bf16.mxu0 %v3443_v15 }
0x1b3c   :  { %3239 = vmatpush3.bf16.msra.mxu0 %v3320_v25 }
0x1b3d   :  { %3240 = vmatprep.subr.bf16.mxu0 %v3443_v15 }
0x1b40   :  { %3241 = vmatpush3.bf16.msra.mxu0 %v3321_v26 }
0x1b41   :  { %3242 = vmatprep.subr.bf16.mxu0 %v3443_v15 }
0x1b44   :  { %3243 = vmatpush3.bf16.msra.mxu0 %v3322_v28 }
0x1bf7   :  { %v2422_v56 = vpop.f32.mrf.mxu0 }
0x1bf8   :  { %v2423_v49 = vadd.f32 %v2855_v53, %v2422_v56 }
0x1bf9   :  { %v3226_v50 = vpop.f32.mrf.mxu0 }
0x1bfa   :  { %v2429_v51 = vadd.f32 %v2423_v49, %v3792_v60 }
0x1bfb   :  { %v2425_v38 = vpop.f32.mrf.mxu0 }
0x1bfc   :  { %v2426_v52 = vadd.f32 %v2855_v53, %v2425_v38  ;;  %v2433_v54 = vsel %vm32_vm0, %v2429_v51, 0.0 }
0x1bfd   :  { %2434 = vadd.xlane.f32.xlu0 %v2433_v54  ;;  %v3227_v55 = vpop.f32.mrf.mxu0  ;;  %v2877_v54 = vld [vmem:[%s4058_s1 + $0x10] ss:$0 sm:$0xff] }
0x1bfe   :  { %v2430_v57 = vadd.f32 %v2426_v52, %v3794_v61  ;;  %v3317_v61 = vld [vmem:[%s4061_s4 + $0x18] sm:$0xff]  }
0x1bff   :  { %3229 = vmatpush3.bf16.msra.mxu1 %v3317_v61 }
0x1c00   :  { %v2436_v58 = vsel %vm32_vm0, %v2430_v57, 0.0  ;;  %3230 = vmatprep.subr.bf16.mxu1 %v3443_v15 }
0x1c01   :  { %2437 = vadd.xlane.f32.xlu1 %v2436_v58 }
0x1c03   :  { %3231 = vmatpush3.bf16.msra.mxu1 %v3318_v3 }
0x1c04   :  { %3248 = vmatprep.subr.bf16.mxu1 %v3443_v15 }
0x1c86   :  { %v2435_v59 = vpop.xlane.xlu0 %2434 }
0x1c87   :  { %v2439_v62 = vmul.f32 0.03125, %v2435_v59 }
0x1c89   :  { %v2441_v63 = vsub.f32 %v2429_v51, %v2439_v62 }
0x1c8a   :  { %v2438_v0 = vpop.xlane.xlu1 %2437 }
0x1c8b   :  { %v2440_v1 = vmul.f32 0.03125, %v2438_v0  ;;  %v2443_v2 = vmul.f32 %v2441_v63, %v2441_v63 }
0x1c8d   :  { %v2442_v4 = vsub.f32 %v2430_v57, %v2440_v1  ;;  %v2445_v60 = vsel %vm32_vm0, %v2443_v2, 0.0 }
0x1c8e   :  { %2446 = vadd.xlane.f32.xlu0 %v2445_v60 }
0x1c8f   :  { %v2444_v5 = vmul.f32 %v2442_v4, %v2442_v4 }
0x1c91   :  { %v2448_v6 = vsel %vm32_vm0, %v2444_v5, 0.0 }
0x1c92   :  { %2449 = vadd.xlane.f32.xlu0 %v2448_v6 }
0x1d17   :  { %v2447_v43 = vpop.xlane.xlu0 %2446 }
0x1d18   :  { %v2451_v46 = vmul.f32 0.03125, %v2447_v43 }
0x1d1a   :  { %v2453_v47 = vadd.f32 1e-12, %v2451_v46 }
0x1d1b   :  { %v2450_v8 = vpop.xlane.xlu0 %2449 }
0x1d1c   :  { %3405 = vrsqrt.f32 %v2453_v47  ;;  %v2452_v9 = vmul.f32 0.03125, %v2450_v8 }
0x1d1e   :  { %v2454_v10 = vadd.f32 1e-12, %v2452_v9 }
0x1d20   :  { %3407 = vrsqrt.f32 %v2454_v10  ;;  %v3323_v10 = vld [vmem:[%s4063_s6 + $0x8] sm:$0xff]  }
0x1d29   :  { %v3406_v11 = vpop.eup %3405 }
0x1d2a   :  { %v2457_v13 = vmul.f32 %v3406_v11, %v2441_v63  ;;  %v3324_v11 = vld [vmem:[%s4063_s6] sm:$0xff]  }
0x1d2c   :  { %v2463_v27 = vmul.f32 %v2859_v14, %v2457_v13 }
0x1d2d   :  { %v3408_v18 = vpop.eup %3407 }
0x1d2e   :  { %v2458_v24 = vmul.f32 %v3408_v18, %v2442_v4  ;;  %v2469_v20 = vadd.f32 %v2860_v7, %v2463_v27 }
0x1d30   :  { %v2464_v19 = vmul.f32 %v2859_v14, %v2458_v24 }
0x1d32   :  { %v2470_v21 = vadd.f32 %v2860_v7, %v2464_v19 }
0x1d34   :  { %v2471_v22 = vpack.c.bf16 %v2470_v21, %v2469_v20 }
0x1d36   :  { %3233 = vmatmul.mubr.msk.bf16.vlgmr.msra.gmra.mxu1 %vm32_vm0, %v2471_v22 }
0x1d37   :  { %3252 = vmatprep.mubr.msk.bf16.mxu1 %vm3444_vm1, %v3443_v15  ;;  %3249 = vmatpush3.bf16.msra.mxu1 %v3323_v10 }
0x1d38   :  { %3250 = vmatprep.subr.bf16.mxu1 %v3443_v15  ;;  %v2884_v15 = vld [vmem:[%s4058_s1 + $0x12] ss:$0 sm:$0xff] }
0x1d3b   :  { %3251 = vmatpush3.bf16.msra.mxu1 %v3324_v11 }
0x1df6   :  { %v2531_v30 = vpop.f32.mrf.mxu1 }
0x1df7   :  { %v2532_v33 = vadd.f32 %v2865_v29, %v2531_v30 }
0x1df8   :  { %v3234_v34 = vpop.f32.mrf.mxu1 }
0x1df9   :  { %v2538_v35 = vmul.f32 %v2532_v33, %v2532_v33 }
0x1dfa   :  { %v2534_v36 = vpop.f32.mrf.mxu1 }
0x1dfb   :  { %v2540_v37 = vmul.f32 %v2538_v35, %v2532_v33  ;;  %v2535_v39 = vadd.f32 %v2865_v29, %v2534_v36 }
0x1dfc   :  { %v3235_v31 = vpop.f32.mrf.mxu1 }
0x1dfd   :  { %v2542_v40 = vmul.f32 0.044715, %v2540_v37  ;;  %v2539_v42 = vmul.f32 %v2535_v39, %v2535_v39  ;;  %v2755_v31 = vlaneseq }
0x1dff   :  { %v2544_v32 = vadd.f32 %v2542_v40, %v2532_v33  ;;  %v2541_v12 = vmul.f32 %v2539_v42, %v2535_v39  ;;  %v2756_v40 = vand.u32 127, %v2755_v31  ;;  %v2885_v42 = vld [vmem:[%s4058_s1 + $0x2] ss:$0 sm:$0xff] }
0x1e01   :  { %v2546_v16 = vmul.f32 0.7978846, %v2544_v32  ;;  %v2543_v17 = vmul.f32 0.044715, %v2541_v12  ;;  %vm2757_vm8 = vcmp.lt.s32.totalorder %v2756_v40, 3 }
0x1e03   :  { %3409 = vtanh.f32 %v2546_v16  ;;  %v2545_v41 = vadd.f32 %v2543_v17, %v2535_v39 }
0x1e05   :  { %v2547_v44 = vmul.f32 0.7978846, %v2545_v41 }
0x1e07   :  { %3411 = vtanh.f32 %v2547_v44 }
0x1e10   :  { %v3410_v45 = vpop.eup %3409 }
0x1e11   :  { %v2550_v48 = vadd.f32 1.0, %v3410_v45 }
0x1e13   :  { %v2552_v56 = vmul.f32 0.5, %v2550_v48 }
0x1e14   :  { %v3412_v53 = vpop.eup %3411 }
0x1e15   :  { %v2551_v49 = vadd.f32 1.0, %v3412_v53  ;;  %v2554_v51 = vmul.f32 %v2552_v56, %v2532_v33 }
0x1e17   :  { %v2553_v50 = vmul.f32 0.5, %v2551_v49 }
0x1e19   :  { %v2555_v38 = vmul.f32 %v2553_v50, %v2535_v39 }
0x1e1b   :  { %v2556_v52 = vpack.c.bf16 %v2555_v38, %v2554_v51 }
0x1e1d   :  { %3245 = vmatmul.mubr.msk.bf16.vlgmr.msra.gmra.mxu0 %vm1290_vm6, %v2556_v52 }
0x1edd   :  { %v2632_v55 = vpop.f32.mrf.mxu0 }
0x1ede   :  { %v2633_v57 = vadd.f32 %v2877_v54, %v2632_v55 }
0x1edf   :  { %v3246_v58 = vpop.f32.mrf.mxu0 }
0x1ee0   :  { %v2639_v59 = vadd.f32 %v2633_v57, %v2469_v20  ;;  %v2883_v20 = vld [vmem:[%s4058_s1 + $0x11] ss:$0 sm:$0xff]  ;;  %s3459_s1 = smov [#allocation2]  }
0x1ee1   :  { %v2635_v62 = vpop.f32.mrf.mxu0  ;;  %s2779_s20 = sshll.u32 %s3459_s1, 4  ;;  %s2780_s20 = int_to_ptr.vmem [resolvable:$true] %s2779_s20 }
0x1ee2   :  { %v2636_v63 = vadd.f32 %v2877_v54, %v2635_v62  ;;  %v2643_v0 = vsel %vm32_vm0, %v2639_v59, 0.0  ;;  %s3421_s21 = scalar_lea.vmem %s2780_s20, 32  ;;  %p3426_p1 = scmp.lt.s32.totalorder %s2780_s20, %s2780_s20 }
0x1ee3   :  { %2644 = vadd.xlane.f32.xlu1 %v2643_v0  ;;  %v3247_v1 = vpop.f32.mrf.mxu0  ;;  %p3422_p0 = scmp.ne.s32.totalorder %s2780_s20, %s3421_s21  ;;  %p3427_p2 = scmp.lt.s32.totalorder %s3421_s21, %s3421_s21 }
0x1ee4   :  { %v2640_v2 = vadd.f32 %v2636_v63, %v2470_v21 }
0x1ee5   :  { %p3428_p3 = por %p3427_p2, %p3426_p1 }
0x1ee6   :  { %v2646_v4 = vsel %vm32_vm0, %v2640_v2, 0.0 }
0x1ee7   :  { %2647 = vadd.xlane.f32.xlu0 %v2646_v4  ;;  %p3429_p4 = pnand %p3428_p3, %p3422_p0 }
0x1f6c   :  { %v2645_v60 = vpop.xlane.xlu1 %2644 }
0x1f6d   :  { %v2649_v5 = vmul.f32 0.03125, %v2645_v60 }
0x1f6f   :  { %v2651_v6 = vsub.f32 %v2639_v59, %v2649_v5 }
0x1f70   :  { %v2648_v61 = vpop.xlane.xlu0 %2647 }
0x1f71   :  { %v2650_v3 = vmul.f32 0.03125, %v2648_v61  ;;  %v2653_v43 = vmul.f32 %v2651_v6, %v2651_v6 }
0x1f73   :  { %v2652_v46 = vsub.f32 %v2640_v2, %v2650_v3  ;;  %v2655_v47 = vsel %vm32_vm0, %v2653_v43, 0.0 }
0x1f74   :  { %2656 = vadd.xlane.f32.xlu1 %v2655_v47 }
0x1f75   :  { %v2654_v8 = vmul.f32 %v2652_v46, %v2652_v46 }
0x1f77   :  { %v2658_v9 = vsel %vm32_vm0, %v2654_v8, 0.0 }
0x1f78   :  { %2659 = vadd.xlane.f32.xlu0 %v2658_v9 }
0x1ffd   :  { %v2657_v13 = vpop.xlane.xlu1 %2656 }
0x1ffe   :  { %v2661_v14 = vmul.f32 0.03125, %v2657_v13 }
0x2000   :  { %v2663_v18 = vadd.f32 1e-12, %v2661_v14 }
0x2001   :  { %v2660_v24 = vpop.xlane.xlu0 %2659 }
0x2002   :  { %3413 = vrsqrt.f32 %v2663_v18  ;;  %v2662_v27 = vmul.f32 0.03125, %v2660_v24 }
0x2004   :  { %v2664_v7 = vadd.f32 1e-12, %v2662_v27 }
0x2006   :  { %3415 = vrsqrt.f32 %v2664_v7 }
0x200f   :  { %v3414_v19 = vpop.eup %3413 }
0x2010   :  { %v2667_v21 = vmul.f32 %v3414_v19, %v2651_v6 }
0x2012   :  { %v2673_v22 = vmul.f32 %v2883_v20, %v2667_v21 }
0x2013   :  { %v3416_v23 = vpop.eup %3415 }
0x2014   :  { %v2668_v25 = vmul.f32 %v3416_v23, %v2652_v46  ;;  %v2679_v28 = vadd.f32 %v2884_v15, %v2673_v22 }
0x2016   :  { %v2674_v26 = vmul.f32 %v2883_v20, %v2668_v25  ;;  %v2681_v30 = vpack.c.bf16 %v2679_v28, %v2679_v28 }
0x2018   :  { %v2680_v29 = vadd.f32 %v2884_v15, %v2674_v26  ;;  %v2694_v35 = vunpack.c.l.b16 %v2681_v30 }
0x201a   :  { %v2682_v33 = vpack.c.bf16 %v2680_v29, %v2680_v29 }
0x201c   :  { %v2695_v34 = vunpack.c.l.b16 %v2682_v33 }
0x201e   :  { %v2696_v36 = vrot.slane %v2695_v34, 7 }
0x2020   :  { %v2698_v37 = vsel %vm2697_vm7, %v2696_v36, %v2694_v35 }
0x2021   :  { %v2699_v39 = vpack.c.b16 %v2698_v37, %v2698_v37 }
0x2023   :  { %3253 = vmatmul.mubr.msk.bf16.vlgmr.msra.gmra.mxu1 %vm32_vm0, %v2699_v39 }
0x20e3   :  { %v2749_v32 = vpop.f32.mrf.mxu1 }
0x20e4   :  { %v2750_v12 = vadd.f32 %v2885_v42, %v2749_v32 }
0x20e5   :  { %v3254_v16 = vpop.f32.mrf.mxu1 }
0x20e6   :  { %v2758_v17 = vsel %vm2757_vm8, %v2750_v12, -1e+30 }
0x20e7   :  { %v2752_v41 = vpop.f32.mrf.mxu1  ;;  %v2760_v44 = vsel %vm2759_vm9, %v2758_v17, -inf }
0x20e8   :  { %2761 = vmax.xlane.f32.xlu0 %v2760_v44 }
0x20e9   :  { %v3255_v45 = vpop.f32.mrf.mxu1 }
0x2171   :  { %v2762_v48 = vpop.xlane.xlu0 %2761 }
0x2172   :  { %v2763_v53 = vsub.f32 %v2758_v17, %v2762_v48 }
0x2174   :  { %v2764_v56 = vmul.f32 1.442695, %v2763_v53 }
0x2176   :  { %3417 = vpow2.f32 %v2764_v56 }
0x2183   :  { %v3418_v49 = vpop.eup %3417 }
0x2184   :  { %v2766_v50 = vsel %vm2759_vm9, %v3418_v49, 0.0 }
0x2185   :  { %2767 = vadd.xlane.f32.xlu1 %v2766_v50 }
0x220e   :  { %v2768_v51 = vpop.xlane.xlu1 %2767 }
0x220f   :  { %3419 = vlog2.f32 %v2768_v51 }
0x221c   :  { %v3420_v38 = vpop.eup %3419 }
0x221d   :  { %v2770_v52 = vmul.f32 0.6931472, %v3420_v38 }
0x221f   :  { %v2771_v54 = vsub.f32 %v2763_v53, %v2770_v52 }
0x2221   :  { %2772 = vst [vmem:[#allocation2] sm:$0x3] %v2771_v54 }
0x2222   :  { %3432 = shalt.err (!%p3429_p4)
}
0x2223   :  { %2782 = dma.vmem_to_hbm [thread:$0]  %s2780_s20, 32, %s4064_s7, [#allocation3]  }
0x2224   :  { %3441 = dma.done.wait [#allocation3], 32  }
0x2225   :  { %3442 = vsyncadd [#allocation3], 4294967264 }
0x2226   :  { %2786 = vsyncpa [#allocation3], 1 }

</bundles_post_ra>
